<compile_context>
chip_gen: v7x
topology: tpu7x:2x2x1
jax: 0.10.0
libtpu: 0.0.40
codegen_flags: <defaults>
</compile_context>

<pallas_src>
import numpy as np
import jax
import jax.numpy as jnp
from jax.experimental import pallas as pl
from jax.experimental.pallas import tpu as pltpu


# ----------------------------- Pallas kernel --------------------------------

def _ppm_kernel(x_ref, g_ref, b_ref, up_ref, o_ref):
    # One (level, batch-tile) per grid step.
    #   x_ref:  (Bblk, Cin*HW)          activations, flattened NCHW (free reshape)
    #   g_ref:  (1, Cin*HW, Cmid*128)   folded pool + 3x3 conv + BN scale (level-resident)
    #   b_ref:  (1, 1, Cmid*128)        folded bias (beta + scale*(conv_bias - mean))
    #   up_ref: (1, 128, SS)            bilinear upsample (align_corners=True), zero pad rows
    #   o_ref:  (Bblk, 1, Cmid, SS)
    llpad = up_ref.shape[1]
    cmid = o_ref.shape[2]

    # pool + conv(3x3) + BN-scale in one matmul: M = batch tile, K = Cin*H*W
    y = jnp.dot(x_ref[...], g_ref[0], preferred_element_type=jnp.float32)  # (Bblk, Cmid*128)
    z = jnp.maximum(y + b_ref[0], 0.0)                                     # bias + ReLU (VPU)

    up = up_ref[0]                                                         # (128, SS)
    for c in range(cmid):
        zc = z[:, c * llpad:(c + 1) * llpad]                               # lane-tile aligned
        o_ref[:, 0, c, :] = jnp.dot(
            zc, up, preferred_element_type=jnp.float32).astype(o_ref.dtype)


# --------------------------- helper matrices (host) --------------------------

def _adaptive_pool_matrix(in_size, out_size):
    """Row i averages input[start:end) like nn.AdaptiveAvgPool2d."""
    P = np.zeros((out_size, in_size), np.float32)
    for i in range(out_size):
        start = (i * in_size) // out_size
        end = -((-(i + 1) * in_size) // out_size)  # ceil
        P[i, start:end] = 1.0 / (end - start)
    return P


def _bilinear_matrix(in_size, out_size):
    """nn.Upsample(mode='bilinear', align_corners=True), separable 1-D weights."""
    U = np.zeros((out_size, in_size), np.float32)
    if in_size == 1:
        U[:, 0] = 1.0
        return U
    scale = (in_size - 1) / (out_size - 1)
    for o in range(out_size):
        src = o * scale
        i0 = min(int(np.floor(src)), in_size - 2)
        f = src - i0
        U[o, i0] += 1.0 - f
        U[o, i0 + 1] += f
    return U


def _shift_matrices(L):
    """(9, L*L, L*L): flat spatial shift with zero padding for each 3x3 tap."""
    S1 = np.zeros((3, L, L), np.float32)
    for d in range(3):
        for i in range(L):
            p = i + d - 1
            if 0 <= p < L:
                S1[d, i, p] = 1.0
    return np.stack([np.kron(S1[dy], S1[dx])
                     for dy in range(3) for dx in range(3)]).astype(np.float32)


def _pick_batch_tile(n):
    if n <= 128:
        return n
    for d in (128, 64, 32, 16, 8):
        if n % d == 0:
            return d
    return n


# ------------------------------ PPM forward ----------------------------------

def init_ppm_params(key, in_channels, out_channels, layer_sizes):
    cmid = out_channels // len(layer_sizes)
    params = []
    for idx in range(len(layer_sizes)):
        k = jax.random.fold_in(key, idx)
        kw, kb, kg, kbe, km, kv = jax.random.split(k, 6)
        Wc = 0.1 * jax.random.normal(kw, (cmid, in_channels, 3, 3), jnp.float32)
        b = 0.1 * jax.random.normal(kb, (cmid,), jnp.float32)
        gamma = 1.0 + 0.1 * jax.random.normal(kg, (cmid,), jnp.float32)
        beta = 0.1 * jax.random.normal(kbe, (cmid,), jnp.float32)
        mean = 0.1 * jax.random.normal(km, (cmid,), jnp.float32)
        var = 1.0 + 0.5 * jax.random.uniform(kv, (cmid,), jnp.float32)
        params.append((Wc, b, gamma, beta, mean, var))
    return params


def ppm_forward(x, params, layer_sizes=(1, 2, 3, 6), block_size=32, eps=1e-5):
    N, Cin, H, W = x.shape
    S = block_size
    HW, SS = H * W, S * S
    num_levels = len(layer_sizes)
    cmid = params[0][0].shape[0]
    LLPAD = 128  # pooled grids have L*L <= 36 -> pad each channel block to one lane tile

    g_t, b_t, up_t = [], [], []
    for L, (Wc, b, gamma, beta, mean, var) in zip(layer_sizes, params):
        LL = L * L
        assert LL <= LLPAD
        pool2 = np.kron(_adaptive_pool_matrix(H, L), _adaptive_pool_matrix(W, L))  # (LL, HW)
        shifts = _shift_matrices(L)                                                # (9, LL, LL)
        sp = shifts @ pool2                                                        # (9, LL, HW)

        scale = np.asarray(gamma) / np.sqrt(np.asarray(var) + eps)                 # (Cmid,)
        wk = np.transpose(np.asarray(Wc), (2, 3, 0, 1)).reshape(9, cmid, Cin)      # [k, c, cin]
        wk = wk * scale[None, :, None]                      # fold BN scale into conv weights

        # G[cin*HW + h, c*LLPAD + p] = sum_k wk[k,c,cin] * (shifts[k] @ pool2)[p, h]
        g_core = np.einsum('kci,kph->ihcp', wk, sp)                                # (Cin,HW,Cmid,LL)
        g = np.zeros((Cin, HW, cmid, LLPAD), np.float32)
        g[..., :LL] = g_core
        g_t.append(g.reshape(Cin * HW, cmid * LLPAD))

        bias = np.asarray(beta) + scale * (np.asarray(b) - np.asarray(mean))       # (Cmid,)
        b_t.append(np.repeat(bias.astype(np.float32), LLPAD))                      # (Cmid*LLPAD,)

        up2 = np.kron(_bilinear_matrix(L, S), _bilinear_matrix(L, S))              # (SS, LL)
        up = np.zeros((LLPAD, SS), np.float32)
        up[:LL, :] = up2.T
        up_t.append(up)

    g_all = jnp.asarray(np.stack(g_t))                   # (LVL, Cin*HW, Cmid*LLPAD)  ~1 MB/level
    b_all = jnp.asarray(np.stack(b_t))[:, None, :]       # (LVL, 1, Cmid*LLPAD)
    up_all = jnp.asarray(np.stack(up_t))                 # (LVL, LLPAD, SS)           ~0.5 MB/level
    x_flat = x.reshape(N, Cin * HW).astype(jnp.float32)  # free NCHW flatten

    bblk = _pick_batch_tile(N)
    assert N % bblk == 0
    nb = N // bblk

    flops = num_levels * (2 * N * (Cin * HW) * (cmid * LLPAD)
                          + 2 * N * cmid * LLPAD * SS)
    bytes_accessed = 4 * (num_levels * N * Cin * HW            # x (worst case: per level)
                          + int(g_all.size) + int(up_all.size) + int(b_all.size)
                          + N * num_levels * cmid * SS)        # output

    out = pl.pallas_call(
        _ppm_kernel,
        out_shape=jax.ShapeDtypeStruct((N, num_levels, cmid, SS), jnp.float32),
        grid=(num_levels, nb),                                 # level OUTER -> constants resident
        in_specs=[
            pl.BlockSpec((bblk, Cin * HW), lambda l, n: (n, 0)),
            pl.BlockSpec((1, Cin * HW, cmid * LLPAD), lambda l, n: (l, 0, 0)),  # level-only index
            pl.BlockSpec((1, 1, cmid * LLPAD), lambda l, n: (l, 0, 0)),
            pl.BlockSpec((1, LLPAD, SS), lambda l, n: (l, 0, 0)),
        ],
        out_specs=pl.BlockSpec((bblk, 1, cmid, SS), lambda l, n: (n, l, 0, 0)),
        compiler_params=pltpu.CompilerParams(
            dimension_semantics=("parallel", "parallel"),      # 4 levels feed both v7x TCs
            vmem_limit_bytes=32 * 1024 * 1024),
        cost_estimate=pl.CostEstimate(flops=flops, transcendentals=0,
                                      bytes_accessed=bytes_accessed),
    )(x_flat, g_all, b_all, up_all)

    # (N, LVL, Cmid, S*S) -> (N, Cout, S, S): pure reshape, matches torch.cat channel order
    return out.reshape(N, num_levels * cmid, S, S)


# ------------------------------ pure-JAX reference ---------------------------

def ppm_reference(x, params, layer_sizes=(1, 2, 3, 6), block_size=32, eps=1e-5):
    N, Cin, H, W = x.shape
    S = block_size
    outs = []
    for L, (Wc, b, gamma, beta, mean, var) in zip(layer_sizes, params):
        Ph = jnp.asarray(_adaptive_pool_matrix(H, L))
        Pw = jnp.asarray(_adaptive_pool_matrix(W, L))
        pooled = jnp.einsum('lh,nchw,mw->nclm', Ph, x, Pw)
        y = jax.lax.conv_general_dilated(
            pooled, Wc, (1, 1), [(1, 1), (1, 1)],
            dimension_numbers=('NCHW', 'OIHW', 'NCHW')) + b[None, :, None, None]
        yb = (y - mean[None, :, None, None]) / jnp.sqrt(var + eps)[None, :, None, None]
        z = jax.nn.relu(yb * gamma[None, :, None, None] + beta[None, :, None, None])
        Uh = jnp.asarray(_bilinear_matrix(L, S))
        Uw = jnp.asarray(_bilinear_matrix(L, S))
        outs.append(jnp.einsum('oi,ncij,pj->ncop', Uh, z, Uw))
    return jnp.concatenate(outs, axis=1)


# ----------------------------------- main -------------------------------------

if __name__ == "__main__":
    key = jax.random.PRNGKey(0)
    k_x, k_p = jax.random.split(key)

    N, Cin, H, W = 2, 4, 16, 16
    Cout = 8
    layer_sizes = (1, 2, 3, 6)
    block_size = 32

    x = jax.random.normal(k_x, (N, Cin, H, W), jnp.float32)
    params = init_ppm_params(k_p, Cin, Cout, layer_sizes)

    out = jax.block_until_ready(ppm_forward(x, params, layer_sizes, block_size))
    assert out.shape == (N, Cout, block_size, block_size), out.shape

    ref = jax.block_until_ready(ppm_reference(x, params, layer_sizes, block_size))
    np.testing.assert_allclose(np.asarray(out), np.asarray(ref), atol=2e-2, rtol=2e-2)

    print("KERNEL_OK")
</pallas_src>

<mosaic_0001>
module attributes {stable_mosaic.version = 11 : i64} {
  func.func @_ppm_kernel(%arg0: i32, %arg1: i32, %arg2: memref<2x1024xf32, #tpu.memory_space<vmem>>, %arg3: memref<1x1024x256xf32, #tpu.memory_space<vmem>>, %arg4: memref<1x1x256xf32, #tpu.memory_space<vmem>>, %arg5: memref<1x128x1024xf32, #tpu.memory_space<vmem>>, %arg6: memref<2x1x2x1024xf32, #tpu.memory_space<vmem>>) attributes {dimension_semantics = [#tpu.dimension_semantics<parallel>, #tpu.dimension_semantics<parallel>], iteration_bounds = array<i64: 4, 1>, scalar_prefetch = 0 : i64, scratch_operands = 0 : i64, tpu.core_type = #tpu.core_type<tc>, window_params = [{transform_indices = @transform_0, window_bounds = array<i64: 2, 1024>}, {transform_indices = @transform_1, window_bounds = array<i64: 1, 1024, 256>}, {transform_indices = @transform_2, window_bounds = array<i64: 1, 1, 256>}, {transform_indices = @transform_3, window_bounds = array<i64: 1, 128, 1024>}, {transform_indices = @transform_4, window_bounds = array<i64: 2, 1, 2, 1024>}]} {
    %c0 = arith.constant 0 : index
    %c0_0 = arith.constant 0 : index
    %0 = vector.load %arg2[%c0, %c0_0] : memref<2x1024xf32, #tpu.memory_space<vmem>>, vector<2x1024xf32>
    %c0_1 = arith.constant 0 : index
    %c0_2 = arith.constant 0 : index
    %c0_3 = arith.constant 0 : index
    %1 = vector.load %arg3[%c0_1, %c0_2, %c0_3] : memref<1x1024x256xf32, #tpu.memory_space<vmem>>, vector<1x1024x256xf32>
    %2 = vector.shape_cast %1 : vector<1x1024x256xf32> to vector<1024x256xf32>
    %cst = arith.constant dense<0.000000e+00> : vector<2x256xf32>
    %3 = tpu.matmul %0, %2, %cst {dimension_numbers = #tpu.dot_dimension_numbers<[1], [0], [0], [1], [0, 0, 1, 1], [], []>} : vector<2x1024xf32>, vector<1024x256xf32>, vector<2x256xf32> -> vector<2x256xf32>
    %c0_4 = arith.constant 0 : index
    %c0_5 = arith.constant 0 : index
    %c0_6 = arith.constant 0 : index
    %4 = vector.load %arg4[%c0_4, %c0_5, %c0_6] : memref<1x1x256xf32, #tpu.memory_space<vmem>>, vector<1x1x256xf32>
    %5 = vector.shape_cast %4 : vector<1x1x256xf32> to vector<1x256xf32>
    %6 = vector.broadcast %5 : vector<1x256xf32> to vector<2x256xf32>
    %7 = arith.addf %3, %6 : vector<2x256xf32>
    %cst_7 = arith.constant 0.000000e+00 : f32
    %8 = vector.broadcast %cst_7 : f32 to vector<2x256xf32>
    %9 = arith.maximumf %7, %8 : vector<2x256xf32>
    %c0_8 = arith.constant 0 : index
    %c0_9 = arith.constant 0 : index
    %c0_10 = arith.constant 0 : index
    %10 = vector.load %arg5[%c0_8, %c0_9, %c0_10] : memref<1x128x1024xf32, #tpu.memory_space<vmem>>, vector<1x128x1024xf32>
    %11 = vector.shape_cast %10 : vector<1x128x1024xf32> to vector<128x1024xf32>
    %12 = vector.extract_strided_slice %9 {offsets = [0, 0], sizes = [2, 128], strides = [1, 1]} : vector<2x256xf32> to vector<2x128xf32>
    %cst_11 = arith.constant dense<0.000000e+00> : vector<2x1024xf32>
    %13 = tpu.matmul %12, %11, %cst_11 {dimension_numbers = #tpu.dot_dimension_numbers<[1], [0], [0], [1], [0, 0, 1, 1], [], []>} : vector<2x128xf32>, vector<128x1024xf32>, vector<2x1024xf32> -> vector<2x1024xf32>
    %c0_12 = arith.constant 0 : index
    %c0_13 = arith.constant 0 : index
    %c0_14 = arith.constant 0 : index
    %c0_15 = arith.constant 0 : index
    %14 = vector.load %arg6[%c0_12, %c0_13, %c0_14, %c0_15] : memref<2x1x2x1024xf32, #tpu.memory_space<vmem>>, vector<2x1x1x1024xf32>
    %15 = vector.shape_cast %14 : vector<2x1x1x1024xf32> to vector<2x1024xf32>
    %16 = vector.shape_cast %13 : vector<2x1024xf32> to vector<2x1x1x1024xf32>
    tpu.vector_store %arg6[%c0_12, %c0_13, %c0_14, %c0_15], %16 {strides = array<i32>} : memref<2x1x2x1024xf32, #tpu.memory_space<vmem>>, vector<2x1x1x1024xf32>,
    %17 = vector.extract_strided_slice %9 {offsets = [0, 128], sizes = [2, 128], strides = [1, 1]} : vector<2x256xf32> to vector<2x128xf32>
    %cst_16 = arith.constant dense<0.000000e+00> : vector<2x1024xf32>
    %18 = tpu.matmul %17, %11, %cst_16 {dimension_numbers = #tpu.dot_dimension_numbers<[1], [0], [0], [1], [0, 0, 1, 1], [], []>} : vector<2x128xf32>, vector<128x1024xf32>, vector<2x1024xf32> -> vector<2x1024xf32>
    %c0_17 = arith.constant 0 : index
    %c0_18 = arith.constant 0 : index
    %c1 = arith.constant 1 : index
    %c0_19 = arith.constant 0 : index
    %19 = vector.load %arg6[%c0_17, %c0_18, %c1, %c0_19] : memref<2x1x2x1024xf32, #tpu.memory_space<vmem>>, vector<2x1x1x1024xf32>
    %20 = vector.shape_cast %19 : vector<2x1x1x1024xf32> to vector<2x1024xf32>
    %21 = vector.shape_cast %18 : vector<2x1024xf32> to vector<2x1x1x1024xf32>
    tpu.vector_store %arg6[%c0_17, %c0_18, %c1, %c0_19], %21 {strides = array<i32>} : memref<2x1x2x1024xf32, #tpu.memory_space<vmem>>, vector<2x1x1x1024xf32>,
    return
  }
  func.func @transform_0(%arg0: i32, %arg1: i32) -> (i32, i32) {
    %c0_i32 = arith.constant 0 : i32
    %c0_i32_0 = arith.constant 0 : i32
    return %arg1, %c0_i32 : i32, i32
  }
  func.func @transform_1(%arg0: i32, %arg1: i32) -> (i32, i32, i32) {
    %c0_i32 = arith.constant 0 : i32
    %c0_i32_0 = arith.constant 0 : i32
    %c0_i32_1 = arith.constant 0 : i32
    return %arg0, %c0_i32, %c0_i32_0 : i32, i32, i32
  }
  func.func @transform_2(%arg0: i32, %arg1: i32) -> (i32, i32, i32) {
    %c0_i32 = arith.constant 0 : i32
    %c0_i32_0 = arith.constant 0 : i32
    %c0_i32_1 = arith.constant 0 : i32
    return %arg0, %c0_i32, %c0_i32_0 : i32, i32, i32
  }
  func.func @transform_3(%arg0: i32, %arg1: i32) -> (i32, i32, i32) {
    %c0_i32 = arith.constant 0 : i32
    %c0_i32_0 = arith.constant 0 : i32
    %c0_i32_1 = arith.constant 0 : i32
    return %arg0, %c0_i32, %c0_i32_0 : i32, i32, i32
  }
  func.func @transform_4(%arg0: i32, %arg1: i32) -> (i32, i32, i32, i32) {
    %c0_i32 = arith.constant 0 : i32
    %c0_i32_0 = arith.constant 0 : i32
    %c0_i32_1 = arith.constant 0 : i32
    return %arg1, %arg0, %c0_i32, %c0_i32_0 : i32, i32, i32, i32
  }
}

</mosaic_0001>

<bundles_post_ra>
// kernel: tpu_custom_call.1
= control target key start
LH: loop header
LB: loop body
LE: loop exit
PB: predicated region body
PF: predicated region fallthrough
CT: control target
= control target key end

     0   :  { %s3845_s0 = inlined_call_operand.hbm [shape: f32[2,1024], index: 0, kind: input, shape index: {}]   ;;  %s3846_s1 = inlined_call_operand.hbm [shape: f32[4,1024,256], index: 1, kind: input, shape index: {}]   ;;  %s3847_s2 = inlined_call_operand.hbm [shape: f32[4,1,256], index: 2, kind: input, shape index: {}]   ;;  %s3848_s3 = inlined_call_operand.hbm [shape: f32[4,128,1024], index: 3, kind: input, shape index: {}]   ;;  %s3849_s4 = inlined_call_operand.hbm [shape: f32[2,4,2,1024], index: 4, kind: output, shape index: {}]  }
   0x1   :  { %3878 = sst [smem:[#allocation33_spill]] %s3846_s1 }
   0x2   :  { %9 = vsyncpa [#allocation3], 0 }
   0x3   :  { %10 = vsyncpa [#allocation6], 0 }
   0x4   :  { %12 = vsyncpa [#allocation6 + $0x1], 0 }
   0x5   :  { %13 = vsyncpa [#allocation9], 0 }
   0x6   :  { %15 = vsyncpa [#allocation9 + $0x1], 0 }
   0x7   :  { %16 = vsyncpa [#allocation4], 0 }
   0x8   :  { %18 = vsyncpa [#allocation4 + $0x1], 0  ;;  %s2837_s15 = smov 0   ;;  %s2839_s16 = smov 0  }
   0x9   :  { %s2841_s17 = smov 0   ;;  %s2843_s18 = smov 0  }
   0xa   :  { %s2845_s19 = smov 0   ;;  %s2847_s20 = smov 0  }
   0xb LB: > { %3879 = sst [smem:[#allocation15_spill]] %s2783_s17  ;;  %s36_s21 = sadd.s32 1, %s2791_s19  ;;  %s2795_s20 = sphi %s2847_s20, %s24_s20   ;;  %s2791_s19 = sphi %s2845_s19, %s3936_s19   ;;  %s2787_s18 = sphi %s2843_s18, %s3935_s18   ;;  %s2783_s17 = sphi %s2841_s17, %s3931_s17   ;;  %s2779_s16 = sphi %s2839_s16, %s3934_s16   ;;  %s2775_s15 = sphi %s2837_s15, %s3933_s15  }
   0xc   : > { %s69_s22 = sadd.s32 1, %s2783_s17  ;;  %p38_p0 = scmp.ge.s32.totalorder %s36_s21, 4 }
   0xd   : > { %p3850_p1 = scmp.ne.s32.totalorder %s2783_s17, %s2779_s16  ;;  %p77_p2 = scmp.eq.s32.totalorder %s2795_s20, 0 }
   0xe   : > { %s3938_s21 = smov (%p38_p0, %s36_s21), 0  ;;  %p2523_p4 = scmp.lt.s32.totalorder %s2795_s20, 4 }
   0xf   : > { %3880 = sst [smem:[#allocation16_spill]] %s3938_s21  ;;  %p78_p3 = por %p77_p2, %p3850_p1 }
  0x10   : > { %s66_s23 = ssub.s32 %s2791_s19, %s3938_s21  ;;  %s200_s24 = sand.u32 1, %s2795_s20  }
  0x11   : > { %p67_p5 = scmp.eq.s32.totalorder %s66_s23, 0  ;;  %s2882_s25 = sand.u32 1, %s2783_s17  }
  0x12   : > { %s1968_s26 = sshll.u32 %s2791_s19, 15  ;;  %s1945_s28 = sshll.u32 %s2882_s25, 11 }
  0x13   : > { %s2886_s27 = scalar_select %p67_p5, %s2783_s17, %s69_s22  }
  0x14   : > { %s3882_s1 = sld [smem:[#allocation33_spill]]  ;;  %p2894_p6 = pnand %p2523_p4, %p78_p3 }
  0x15   : > { %3881 = sst [smem:[#allocation17_spill]] %s2886_s27  ;;  %s204_s7 = scalar_lea.vmem [#allocation5], %s1945_s28 }
  0x16   : > { %s3883_s6 = scalar_select %p2894_p6, 1, 0 }
  0x17   : > { %s211_s8 = sshll.u32 %s204_s7, 4  ;;  %s2900_s9 = scalar_lea.sflag [#allocation6], %s200_s24  ;;  %s2898_s8 = int_to_ptr.vmem [resolvable:$true] %s211_s8 }
  0x18   : > { %p2906_p8 = pneg %p2894_p6 }
  0x1a   : > { %s2892_s5 = scalar_lea.hbm %s3882_s1, %s1968_s26  ;;  %s2592_s14 = scalar_lea.hbm %s3882_s1, 131072 }
  0x1b   : > { %s2587_s10 = scalar_lea.hbm %s2892_s5, 32768  ;;  %p2593_p11 = scmp.lt.u32.totalorder %s2892_s5, %s3882_s1 }
  0x1c   : > { %p2588_p7 = scmp.ne.s32.totalorder %s2892_s5, %s2587_s10  ;;  %p2594_p12 = scmp.lt.u32.totalorder %s2592_s14, %s2587_s10 }
  0x1d   : > { %s3884_s11 = scalar_select %p2906_p8, 1, 0 }
  0x1e   : > { %p2590_p9 = pnand %p2906_p8, %p2588_p7  ;;  %p2595_p13 = por %p2594_p12, %p2593_p11 }
  0x1f   : > { %p2596_p0 = scmp.lt.u32.totalorder %s2587_s10, %s2892_s5 }
  0x20   : > { %p2591_p10 = pneg %p2590_p9 }
  0x21   : > { %p2597_p2 = por %p2596_p0, %p2595_p13 }
  0x23   : > { %p2598_p3 = pnand %p2597_p2, %p2591_p10 }
  0x25   : > { %2601 = shalt.err (!%p2598_p3)
}
  0x26   : > { %s2602_s24 = scalar_lea.vmem %s2898_s8, 32768  ;;  %s2797_s26 = smov [#allocation5]  }
  0x27   : > { %p2603_p4 = scmp.ne.s32.totalorder %s2898_s8, %s2602_s24  ;;  %s2607_s28 = sshll.u32 %s2797_s26, 4  ;;  %s2608_s28 = int_to_ptr.vmem [resolvable:$false] %s2607_s28 }
  0x28   : > { %s2609_s29 = scalar_lea.vmem %s2608_s28, 65536  ;;  %p2610_p9 = scmp.lt.s32.totalorder %s2898_s8, %s2608_s28 }
  0x29   : > { %p2605_p5 = pnand %p2603_p4, %p2906_p8  ;;  %p2611_p1 = scmp.lt.s32.totalorder %s2609_s29, %s2602_s24 }
  0x2b   : > { %p2606_p7 = pneg %p2605_p5  ;;  %p2612_p11 = por %p2611_p1, %p2610_p9 }
  0x2d   : > { %p2613_p12 = pnand %p2612_p11, %p2606_p7 }
  0x2f   : > { %2616 = shalt.err (!%p2613_p12)
}
  0x30   : > { %s2798_s30 = smov 256   ;;  %s2799_s7 = smov 16  }
  0x31   : > { %2511 = dma.hbm_to_vmem [thread:$0]  (!%p2894_p6), %s2892_s5, 32768, %s2898_s8, %s2900_s9, %s2798_s30, %s2798_s30, %s2799_s7  }
  0x32   : > { %s2931_s10 = sadd.s32 4294967295, %s2795_s20   ;;  %s1941_s12 = sadd.s32 4294967294, %s2795_s20  }
  0x33   : > { %p82_p1 = scmp.ne.s32.totalorder %s2779_s16, %s2775_s15  ;;  %p3854_p10 = scmp.eq.s32.totalorder %s2931_s10, 0 }
  0x34   : > { %p160_p13 = scmp.eq.s32.totalorder %s2931_s10, 3  ;;  %p166_p0 = scmp.eq.s32.totalorder %s1941_s12, 3 }
  0x35   : > { %p1942_p2 = scmp.ge.s32.totalorder %s2795_s20, 1  ;;  %p2941_p3 = por %p3854_p10, %p82_p1 }
  0x36   : > { %p3886_p4 = scmp.ne.s32.totalorder %s2783_s17, %s2779_s16  ;;  %p2952_p7 = por %p166_p0, %p82_p1 }
  0x37   : > { %s3885_s13 = scalar_select %p2941_p3, 1, 0 }
  0x38   : > { %p2948_p5 = por %p160_p13, %p3886_p4  ;;  %p173_p9 = scmp.lt.s32.totalorder %s2795_s20, 5 }
  0x39   : > { %s3888_s8 = scalar_select %p2952_p7, 1, 0 }
  0x3a   : > { %s3887_s5 = scalar_select %p2948_p5, 1, 0 }
  0x3b   : > { %3889 = sst [smem:[#allocation18_spill]] %s3888_s8  ;;  %p2957_p11 = pnand %p1942_p2, %p173_p9 }
  0x3c   : > { %s2800_s22 = smov [#allocation2]   ;;  %s1948_s24 = sshll.u32 %s2882_s25, 1 }
  0x3d   : > { %s3890_s14 = scalar_select %p2957_p11, 1, 0 }
  0x3e   : > { %s189_s23 = sshll.u32 %s2800_s22, 4  ;;  %p2504_p12 = pneg %p2957_p11  ;;  %s190_s23 = int_to_ptr.vmem [resolvable:$true] %s189_s23 }
  0x3f   : > { %s1969_s26 = sshll.u32 %s2791_s19, 5  ;;  %s225_s28 = scalar_lea.vmem [#allocation7], %s1948_s24 }
  0x40   : > { %s233_s29 = sshll.u32 %s225_s28, 4  ;;  %p2967_p1 = pnand %p2504_p12, %p3854_p10  ;;  %s2976_s29 = int_to_ptr.vmem [resolvable:$true] %s233_s29 }
  0x41   : > { %s2974_s1 = scalar_lea.hbm %s3847_s2, %s1969_s26  ;;  %s1951_s22 = sshll.u32 %s2882_s25, 10 }
  0x42   : > { %s2617_s17 = scalar_lea.hbm %s3845_s0, 256  ;;  %p2619_p0 = pneg %p2967_p1 }
  0x43   : > { %p2618_p13 = scmp.ne.s32.totalorder %s3845_s0, %s2617_s17  ;;  %p2624_p9 = scmp.lt.u32.totalorder %s2617_s17, %s3845_s0 }
  0x45   : > { %p2620_p2 = pnand %p2619_p0, %p2618_p13 }
  0x47   : > { %p2621_p4 = pneg %p2620_p2 }
  0x49   : > { %p2626_p12 = pnand %p2624_p9, %p2621_p4 }
  0x4b   : > { %2629 = shalt.err (!%p2626_p12)
}
  0x4c   : > { %s2630_s26 = scalar_lea.vmem %s190_s23, 256  ;;  %p2638_p3 = scmp.lt.s32.totalorder %s190_s23, %s190_s23 }
  0x4d   : > { %p2631_p10 = scmp.ne.s32.totalorder %s190_s23, %s2630_s26  ;;  %p2639_p11 = scmp.lt.s32.totalorder %s2630_s26, %s2630_s26 }
  0x4f   : > { %p2633_p7 = pnand %p2631_p10, %p2619_p0  ;;  %p2640_p6 = por %p2639_p11, %p2638_p3 }
  0x51   : > { %p2634_p5 = pneg %p2633_p7 }
  0x53   : > { %p2641_p8 = pnand %p2640_p6, %p2634_p5 }
  0x55   : > { %2644 = shalt.err (!%p2641_p8)
}
  0x56   : > { %2507 = dma.hbm_to_vmem [thread:$0]  (!%p2967_p1), %s3845_s0, 256, %s190_s23, [#allocation3]  }
  0x57   : > { %s2645_s17 = scalar_lea.hbm %s2974_s1, 32  ;;  %p3892_p10 = scmp.ne.s32.totalorder %s3884_s11, 0 }
  0x58   : > { %p2646_p13 = scmp.ne.s32.totalorder %s2974_s1, %s2645_s17  ;;  %s2650_s24 = scalar_lea.hbm %s3847_s2, 128 }
  0x59   : > { %p2651_p6 = scmp.lt.u32.totalorder %s2974_s1, %s3847_s2  ;;  %p2652_p8 = scmp.lt.u32.totalorder %s2650_s24, %s2645_s17 }
  0x5a   : > { %p2648_p7 = pnand %p2646_p13, %p3892_p10  ;;  %p2654_p5 = scmp.lt.u32.totalorder %s2645_s17, %s2974_s1 }
  0x5b   : > { %p2653_p3 = por %p2652_p8, %p2651_p6 }
  0x5c   : > { %p2649_p0 = pneg %p2648_p7 }
  0x5d   : > { %p2655_p11 = por %p2654_p5, %p2653_p3 }
  0x5f   : > { %p2656_p2 = pnand %p2655_p11, %p2649_p0 }
  0x61   : > { %2659 = shalt.err (!%p2656_p2)
}
  0x62   : > { %s2660_s23 = scalar_lea.vmem %s2976_s29, 32  ;;  %s2801_s7 = smov [#allocation7]  }
  0x63   : > { %p2661_p1 = scmp.ne.s32.totalorder %s2976_s29, %s2660_s23  ;;  %s2665_s26 = sshll.u32 %s2801_s7, 4  ;;  %s2666_s26 = int_to_ptr.vmem [resolvable:$false] %s2665_s26 }
  0x64   : > { %s2667_s21 = scalar_lea.vmem %s2666_s26, 64  ;;  %p2668_p12 = scmp.lt.s32.totalorder %s2976_s29, %s2666_s26 }
  0x65   : > { %p2663_p4 = pnand %p2661_p1, %p3892_p10  ;;  %p2669_p13 = scmp.lt.s32.totalorder %s2667_s21, %s2660_s23 }
  0x67   : > { %p2664_p9 = pneg %p2663_p4  ;;  %p2670_p7 = por %p2669_p13, %p2668_p12 }
  0x69   : > { %p2671_p6 = pnand %p2670_p7, %p2664_p9 }
  0x6b   : > { %2674 = shalt.err (!%p2671_p6)
}
  0x6c   : > { %p3893_p0 = scmp.ne.s32.totalorder %s3883_s6, 0  ;;  %s1970_s27 = sshll.u32 %s2791_s19, 14 }
  0x6d   : > { %s3021_s12 = scalar_lea.hbm %s3848_s3, %s1970_s27  ;;  %s244_s24 = scalar_lea.vmem [#allocation8], %s1951_s22 }
  0x6e   : > { %2514 = dma.hbm_to_vmem [thread:$0]  (!%p3893_p0), %s2974_s1, 32, %s2976_s29, %s2900_s9  }
  0x6f   : > { %s251_s28 = sshll.u32 %s244_s24, 4  ;;  %s241_s30 = scalar_lea.sflag [#allocation9], %s2882_s25  ;;  %s3025_s28 = int_to_ptr.vmem [resolvable:$true] %s251_s28 }
  0x70   : > { %s2675_s23 = scalar_lea.hbm %s3021_s12, 16384  ;;  %s2680_s29 = scalar_lea.hbm %s3848_s3, 65536 }
  0x71   : > { %p2676_p8 = scmp.ne.s32.totalorder %s3021_s12, %s2675_s23  ;;  %p2681_p11 = scmp.lt.u32.totalorder %s3021_s12, %s3848_s3 }
  0x72   : > { %p2682_p2 = scmp.lt.u32.totalorder %s2680_s29, %s2675_s23  ;;  %p2684_p4 = scmp.lt.u32.totalorder %s2675_s23, %s3021_s12 }
  0x73   : > { %p2678_p3 = pnand %p2676_p8, %p3892_p10 }
  0x74   : > { %p2683_p1 = por %p2682_p2, %p2681_p11 }
  0x75   : > { %p2679_p5 = pneg %p2678_p3 }
  0x76   : > { %p2685_p9 = por %p2684_p4, %p2683_p1 }
  0x78   : > { %p2686_p12 = pnand %p2685_p9, %p2679_p5 }
  0x7a   : > { %2689 = shalt.err (!%p2686_p12)
}
  0x7b   : > { %s2690_s22 = scalar_lea.vmem %s3025_s28, 16384  ;;  %s2802_s21 = smov [#allocation8]  }
  0x7c   : > { %p2691_p13 = scmp.ne.s32.totalorder %s3025_s28, %s2690_s22  ;;  %s2695_s27 = sshll.u32 %s2802_s21, 4  ;;  %s2696_s27 = int_to_ptr.vmem [resolvable:$false] %s2695_s27 }
  0x7d   : > { %s2697_s17 = scalar_lea.vmem %s2696_s27, 32768  ;;  %p2698_p8 = scmp.lt.s32.totalorder %s3025_s28, %s2696_s27 }
  0x7e   : > { %p2693_p7 = pnand %p2691_p13, %p3892_p10  ;;  %p2699_p3 = scmp.lt.s32.totalorder %s2697_s17, %s2690_s22 }
  0x80   : > { %p2694_p6 = pneg %p2693_p7  ;;  %p2700_p11 = por %p2699_p3, %p2698_p8 }
  0x82   : > { %p2701_p2 = pnand %p2700_p11, %p2694_p6 }
  0x84   : > { %2704 = shalt.err (!%p2701_p2)
}
  0x85   : > { %s2803_s8 = smov 1024   ;;  %s2804_s24 = smov 64  }
  0x86   : > { %2517 = dma.hbm_to_vmem [thread:$0]  (!%p3893_p0), %s3021_s12, 16384, %s3025_s28, %s241_s30, %s2803_s8, %s2803_s8, %s2804_s24  }
  0x87   : > { %p3894_p10 = scmp.ne.s32.totalorder %s3890_s14, 0 }
  0x89   : > { %263 = sbr.rel (%p3894_p10) target bundleno = 1094 (0x446), region = 36 }
  0x90   : > { %p3895_p5 = scmp.eq.s32.totalorder %s2931_s10, 0 }
  0x92   : > { %2758 = dma.done.wait (%p3895_p5), [#allocation3], 256   ;;  %p3896_p1 = pmov %p3895_p5 }
  0x93   : > { %s269_s11 = sand.u32 1, %s2931_s10   ;;  %s3059_s23 = sand.u32 1, %s2779_s16  }
  0x94   : > { %2760 = vsyncadd (%p3896_p1), [#allocation3], 4294967040  ;;  %s1956_s1 = sshll.u32 %s3059_s23, 11  ;;  %s270_s6 = scalar_lea.sflag [#allocation6], %s269_s11 }
  0x95   : > { %s3062_s25 = scalar_lea.vmem [#allocation5], %s1956_s1  ;;  %p3897_p0 = scmp.ne.s32.totalorder %s3885_s13, 0 }
  0x97   : > { %2762 = dma.done.wait (%p3897_p0), %s270_s6, 32800  }
  0x98   : > { %2764 = vsyncadd (%p3897_p0), %s270_s6, 4294934496  ;;  %s1957_s14 = sshll.u32 %s3059_s23, 1  ;;  %s1958_s12 = sshll.u32 %s3059_s23, 10 }
  0x99   : > { %s3070_s28 = scalar_lea.vmem [#allocation7], %s1957_s14  ;;  %s288_s10 = scalar_lea.sflag [#allocation9], %s3059_s23 }
  0x9a   : > { %s3073_s30 = scalar_lea.vmem [#allocation8], %s1958_s12 }
  0x9b   : > { %2766 = dma.done.wait (%p3897_p0), %s288_s10, 16384  }
  0x9c   : > { %2768 = vsyncadd (%p3897_p0), %s288_s10, 4294950912  ;;  %v330_v0 = vld [vmem:[%s3062_s25 + $0x8] sm:$0xff]  ;;  %v332_v1 = vld [vmem:[%s3062_s25 + $0x18] sm:$0xff]  ;;  %v587_v25 = vlaneseq  ;;  %v2805_v26 = vmov 1983009808   ;;  %s1959_s13 = sshll.u32 %s3059_s23, 5 }
  0x9d   : > { %v329_v2 = vld [vmem:[%s3062_s25] sm:$0xff]  ;;  %v1972_v3 = vpack.c.bf16 %v332_v1, %v330_v0  ;;  %v331_v4 = vld [vmem:[%s3062_s25 + $0x10] sm:$0xff]  ;;  %v334_v5 = vld [vmem:[%s3062_s25 + $0x28] sm:$0xff]  ;;  %v601_v27 = vunpack.c.l.s4 %v2805_v26  ;;  %s3784_s9 = scalar_lea.vmem [#allocation10], %s1959_s13  ;;  %s1971_s7 = sshll.u32 %s2787_s18, 8 }
  0x9e   : > { %v336_v6 = vld [vmem:[%s3062_s25 + $0x38] sm:$0xff]  ;;  %v1974_v7 = vpack.c.bf16 %v331_v4, %v329_v2  ;;  %v333_v9 = vld [vmem:[%s3062_s25 + $0x20] sm:$0xff]  ;;  %v335_v10 = vld [vmem:[%s3062_s25 + $0x30] sm:$0xff]  ;;  %v3101_v34 = vshrl.u32 %v587_v25, 7  ;;  %s1799_s29 = sshll.u32 %s3784_s9, 4  ;;  %s3795_s21 = scalar_lea.hbm %s3849_s4, %s1971_s7  ;;  %s3790_s29 = int_to_ptr.vmem [resolvable:$true] %s1799_s29 }
  0x9f   : > { %v1976_v8 = vpack.c.bf16 %v336_v6, %v334_v5  ;;  %v338_v11 = vld [vmem:[%s3062_s25 + $0x48] sm:$0xff]  ;;  %1973 = vmatprep.subr.bf16.mxu0 %v1972_v3  ;;  %v340_v12 = vld [vmem:[%s3062_s25 + $0x58] sm:$0xff]  ;;  %v1978_v13 = vpack.c.bf16 %v335_v10, %v333_v9  ;;  %v337_v15 = vld [vmem:[%s3062_s25 + $0x40] sm:$0xff]  ;;  %v602_v35 = vunpack.c.0.s8 %v601_v27  ;;  %s1783_s27 = scalar_lea.sflag [#allocation4], %s3059_s23  ;;  %s2705_s18 = scalar_lea.vmem %s3790_s29, 512 }
  0xa0   : > { %1975 = vmatpush1.bf16.msra.mxu0 %v1974_v7  ;;  %v1980_v14 = vpack.c.bf16 %v340_v12, %v338_v11  ;;  %v339_v16 = vld [vmem:[%s3062_s25 + $0x50] sm:$0xff]  ;;  %v342_v17 = vld [vmem:[%s3062_s25 + $0x68] sm:$0xff]  ;;  %v344_v18 = vld [vmem:[%s3062_s25 + $0x78] sm:$0xff]  ;;  %p2706_p4 = scmp.ne.s32.totalorder %s3790_s29, %s2705_s18  ;;  %p3927_p9 = scmp.ne.s32.totalorder %s3887_s5, 0 }
  0xa1   : > { %1977 = vmatprep.subr.bf16.mxu0 %v1976_v8  ;;  %v1982_v19 = vpack.c.bf16 %v339_v16, %v337_v15  ;;  %v1984_v20 = vpack.c.bf16 %v344_v18, %v342_v17  ;;  %v341_v21 = vld [vmem:[%s3062_s25 + $0x60] sm:$0xff]  ;;  %v343_v22 = vld [vmem:[%s3062_s25 + $0x70] sm:$0xff]  ;;  %v346_v23 = vld [vmem:[%s3062_s25 + $0x88] sm:$0xff]  ;;  %v3108_v42 = vsub.s32 %v602_v35, %v3101_v34  ;;  %s2808_s17 = smov [#allocation10]  }
  0xa2   : > { %v348_v24 = vld [vmem:[%s3062_s25 + $0x98] sm:$0xff]  ;;  %v1986_v28 = vpack.c.bf16 %v343_v22, %v341_v21  ;;  %v345_v30 = vld [vmem:[%s3062_s25 + $0x80] sm:$0xff]  ;;  %v347_v31 = vld [vmem:[%s3062_s25 + $0x90] sm:$0xff]  ;;  %p2707_p12 = pnand %p2706_p4, %p3927_p9  ;;  %s2709_s8 = sshll.u32 %s2808_s17, 4  ;;  %s2710_s8 = int_to_ptr.vmem [resolvable:$false] %s2709_s8 }
  0xa3   : > { %v1988_v29 = vpack.c.bf16 %v348_v24, %v346_v23  ;;  %v350_v32 = vld [vmem:[%s3062_s25 + $0xa8] sm:$0xff]  ;;  %v352_v33 = vld [vmem:[%s3062_s25 + $0xb8] sm:$0xff]  ;;  %v1990_v36 = vpack.c.bf16 %v347_v31, %v345_v30  ;;  %v349_v38 = vld [vmem:[%s3062_s25 + $0xa0] sm:$0xff]  ;;  %s2711_s24 = scalar_lea.vmem %s2710_s8, 1024  ;;  %p2712_p7 = scmp.lt.s32.totalorder %s3790_s29, %s2710_s8 }
  0xa4   : > { %1979 = vmatpush1.bf16.msra.mxu0 %v1978_v13  ;;  %v1992_v37 = vpack.c.bf16 %v352_v33, %v350_v32  ;;  %v351_v39 = vld [vmem:[%s3062_s25 + $0xb0] sm:$0xff]  ;;  %v354_v40 = vld [vmem:[%s3062_s25 + $0xc8] sm:$0xff]  ;;  %v356_v41 = vld [vmem:[%s3062_s25 + $0xd8] sm:$0xff]  ;;  %p2708_p13 = pneg %p2707_p12  ;;  %p2713_p6 = scmp.lt.s32.totalorder %s2711_s24, %s2705_s18 }
  0xa5   : > { %1981 = vmatprep.subr.bf16.mxu0 %v1980_v14  ;;  %v1994_v43 = vpack.c.bf16 %v351_v39, %v349_v38  ;;  %v1996_v44 = vpack.c.bf16 %v356_v41, %v354_v40  ;;  %v353_v45 = vld [vmem:[%s3062_s25 + $0xc0] sm:$0xff]  ;;  %v355_v46 = vld [vmem:[%s3062_s25 + $0xd0] sm:$0xff]  ;;  %v358_v48 = vld [vmem:[%s3062_s25 + $0xe8] sm:$0xff] }
  0xa6   : > { %v3112_v47 = vld [vmem:[#allocation2] sm:$0xff]  ;;  %v360_v49 = vld [vmem:[%s3062_s25 + $0xf8] sm:$0xff]  ;;  %v1998_v51 = vpack.c.bf16 %v355_v46, %v353_v45  ;;  %v357_v54 = vld [vmem:[%s3062_s25 + $0xe0] sm:$0xff]  ;;  %p2714_p8 = por %p2713_p6, %p2712_p7 }
  0xa7   : > { %v3118_v50 = vrot.slane %v3112_v47, %v3108_v42  ;;  %v2000_v53 = vpack.c.bf16 %v360_v49, %v358_v48  ;;  %v359_v55 = vld [vmem:[%s3062_s25 + $0xf0] sm:$0xff]  ;;  %v362_v56 = vld [vmem:[%s3062_s25 + $0x108] sm:$0xff]  ;;  %v364_v57 = vld [vmem:[%s3062_s25 + $0x118] sm:$0xff]  ;;  %v599_v38 = vcombine.high %v3112_v47, %v3112_v47 }
  0xa8   : > { %1983 = vmatpush1.bf16.msra.mxu0 %v1982_v19  ;;  %v2002_v58 = vpack.c.bf16 %v359_v55, %v357_v54  ;;  %v2004_v59 = vpack.c.bf16 %v364_v57, %v362_v56  ;;  %v361_v60 = vld [vmem:[%s3062_s25 + $0x100] sm:$0xff]  ;;  %v363_v61 = vld [vmem:[%s3062_s25 + $0x110] sm:$0xff]  ;;  %v366_v62 = vld [vmem:[%s3062_s25 + $0x128] sm:$0xff]  ;;  %p2715_p3 = pnand %p2714_p8, %p2708_p13 }
  0xa9   : > { %1985 = vmatprep.subr.bf16.mxu0 %v1984_v20  ;;  %v614_v52 = vcombine.high %v3118_v50, %v3118_v50  ;;  %v368_v63 = vld [vmem:[%s3062_s25 + $0x138] sm:$0xff]  ;;  %v2006_v0 = vpack.c.bf16 %v363_v61, %v361_v60  ;;  %v365_v2 = vld [vmem:[%s3062_s25 + $0x120] sm:$0xff]  ;;  %v367_v3 = vld [vmem:[%s3062_s25 + $0x130] sm:$0xff]  ;;  %v3161_v46 = vrot.slane %v599_v38, %v3108_v42 }
  0xaa   : > { %v2008_v1 = vpack.c.bf16 %v368_v63, %v366_v62  ;;  %v370_v4 = vld [vmem:[%s3062_s25 + $0x148] sm:$0xff]  ;;  %v372_v5 = vld [vmem:[%s3062_s25 + $0x158] sm:$0xff]  ;;  %v2010_v6 = vpack.c.bf16 %v367_v3, %v365_v2  ;;  %v369_v8 = vld [vmem:[%s3062_s25 + $0x140] sm:$0xff] }
  0xab   : > { %705 = vmatprep.mubr.f32.mxu0 %v614_v52  ;;  %v2012_v7 = vpack.c.bf16 %v372_v5, %v370_v4  ;;  %v371_v9 = vld [vmem:[%s3062_s25 + $0x150] sm:$0xff]  ;;  %v374_v10 = vld [vmem:[%s3062_s25 + $0x168] sm:$0xff]  ;;  %v376_v11 = vld [vmem:[%s3062_s25 + $0x178] sm:$0xff]  ;;  %v615_v54 = vcombine.high %v3161_v46, %v3161_v46 }
  0xac   : > { %1987 = vmatpush1.bf16.msra.mxu0 %v1986_v28  ;;  %v2014_v12 = vpack.c.bf16 %v371_v9, %v369_v8  ;;  %v2016_v13 = vpack.c.bf16 %v376_v11, %v374_v10  ;;  %v373_v14 = vld [vmem:[%s3062_s25 + $0x160] sm:$0xff]  ;;  %v375_v15 = vld [vmem:[%s3062_s25 + $0x170] sm:$0xff]  ;;  %v378_v16 = vld [vmem:[%s3062_s25 + $0x188] sm:$0xff] }
  0xad   : > { %1989 = vmatprep.subr.bf16.mxu0 %v1988_v29  ;;  %v380_v17 = vld [vmem:[%s3062_s25 + $0x198] sm:$0xff]  ;;  %v2018_v18 = vpack.c.bf16 %v375_v15, %v373_v14  ;;  %v377_v20 = vld [vmem:[%s3062_s25 + $0x180] sm:$0xff]  ;;  %v379_v21 = vld [vmem:[%s3062_s25 + $0x190] sm:$0xff] }
  0xae   : > { %v2020_v19 = vpack.c.bf16 %v380_v17, %v378_v16  ;;  %v382_v22 = vld [vmem:[%s3062_s25 + $0x1a8] sm:$0xff]  ;;  %v384_v23 = vld [vmem:[%s3062_s25 + $0x1b8] sm:$0xff]  ;;  %v2022_v24 = vpack.c.bf16 %v379_v21, %v377_v20  ;;  %v381_v26 = vld [vmem:[%s3062_s25 + $0x1a0] sm:$0xff] }
  0xaf   : > { %v2024_v25 = vpack.c.bf16 %v384_v23, %v382_v22  ;;  %v383_v27 = vld [vmem:[%s3062_s25 + $0x1b0] sm:$0xff]  ;;  %v386_v28 = vld [vmem:[%s3062_s25 + $0x1c8] sm:$0xff]  ;;  %v388_v29 = vld [vmem:[%s3062_s25 + $0x1d8] sm:$0xff] }
  0xb0   : > { %1991 = vmatpush1.bf16.msra.mxu0 %v1990_v36  ;;  %v2026_v30 = vpack.c.bf16 %v383_v27, %v381_v26  ;;  %v2028_v31 = vpack.c.bf16 %v388_v29, %v386_v28  ;;  %v385_v32 = vld [vmem:[%s3062_s25 + $0x1c0] sm:$0xff]  ;;  %v387_v33 = vld [vmem:[%s3062_s25 + $0x1d0] sm:$0xff]  ;;  %v390_v35 = vld [vmem:[%s3062_s25 + $0x1e8] sm:$0xff] }
  0xb1   : > { %1993 = vmatprep.subr.bf16.mxu0 %v1992_v37  ;;  %v392_v36 = vld [vmem:[%s3062_s25 + $0x1f8] sm:$0xff]  ;;  %v2030_v37 = vpack.c.bf16 %v387_v33, %v385_v32  ;;  %v389_v40 = vld [vmem:[%s3062_s25 + $0x1e0] sm:$0xff]  ;;  %v391_v41 = vld [vmem:[%s3062_s25 + $0x1f0] sm:$0xff] }
  0xb2   : > { %v2032_v39 = vpack.c.bf16 %v392_v36, %v390_v35  ;;  %v2034_v45 = vpack.c.bf16 %v391_v41, %v389_v40  ;;  %v393_v49 = vld [vmem:[%s3062_s25 + $0x200] sm:$0xff]  ;;  %v398_v47 = vld [vmem:[%s3062_s25 + $0x228] sm:$0xff]  ;;  %v400_v52 = vld [vmem:[%s3062_s25 + $0x238] sm:$0xff] }
  0xb3   : > { %v2040_v55 = vpack.c.bf16 %v400_v52, %v398_v47  ;;  %v397_v56 = vld [vmem:[%s3062_s25 + $0x220] sm:$0xff]  ;;  %v399_v57 = vld [vmem:[%s3062_s25 + $0x230] sm:$0xff]  ;;  %v410_v5 = vld [vmem:[%s3062_s25 + $0x288] sm:$0xff] }
  0xb4   : > { %1995 = vmatpush1.bf16.msra.mxu0 %v1994_v43  ;;  %v394_v43 = vld [vmem:[%s3062_s25 + $0x208] sm:$0xff]  ;;  %v2042_v60 = vpack.c.bf16 %v399_v57, %v397_v56  ;;  %v401_v62 = vld [vmem:[%s3062_s25 + $0x240] sm:$0xff]  ;;  %v403_v63 = vld [vmem:[%s3062_s25 + $0x250] sm:$0xff] }
  0xb5   : > { %1997 = vmatprep.subr.bf16.mxu0 %v1996_v44  ;;  %v396_v44 = vld [vmem:[%s3062_s25 + $0x218] sm:$0xff]  ;;  %v2046_v2 = vpack.c.bf16 %v403_v63, %v401_v62  ;;  %v407_v4 = vld [vmem:[%s3062_s25 + $0x270] sm:$0xff]  ;;  %v409_v9 = vld [vmem:[%s3062_s25 + $0x280] sm:$0xff] }
  0xb6   : > { %v2036_v48 = vpack.c.bf16 %v396_v44, %v394_v43  ;;  %v411_v10 = vld [vmem:[%s3062_s25 + $0x290] sm:$0xff]  ;;  %v414_v11 = vld [vmem:[%s3062_s25 + $0x2a8] sm:$0xff]  ;;  %v413_v15 = vld [vmem:[%s3062_s25 + $0x2a0] sm:$0xff] }
  0xb7   : > { %v415_v16 = vld [vmem:[%s3062_s25 + $0x2b0] sm:$0xff]  ;;  %v418_v17 = vld [vmem:[%s3062_s25 + $0x2c8] sm:$0xff]  ;;  %v417_v21 = vld [vmem:[%s3062_s25 + $0x2c0] sm:$0xff] }
  0xb8   : > { %1999 = vmatpush1.bf16.msra.mxu0 %v1998_v51  ;;  %v395_v51 = vld [vmem:[%s3062_s25 + $0x210] sm:$0xff]  ;;  %v422_v23 = vld [vmem:[%s3062_s25 + $0x2e8] sm:$0xff]  ;;  %v421_v27 = vld [vmem:[%s3062_s25 + $0x2e0] sm:$0xff] }
  0xb9   : > { %2001 = vmatprep.subr.bf16.mxu0 %v2000_v53  ;;  %v2038_v53 = vpack.c.bf16 %v395_v51, %v393_v49  ;;  %v419_v22 = vld [vmem:[%s3062_s25 + $0x2d0] sm:$0xff]  ;;  %v426_v29 = vld [vmem:[%s3062_s25 + $0x308] sm:$0xff]  ;;  %v425_v33 = vld [vmem:[%s3062_s25 + $0x300] sm:$0xff] }
  0xba   : > { %v423_v28 = vld [vmem:[%s3062_s25 + $0x2f0] sm:$0xff]  ;;  %v430_v36 = vld [vmem:[%s3062_s25 + $0x328] sm:$0xff]  ;;  %v429_v40 = vld [vmem:[%s3062_s25 + $0x320] sm:$0xff] }
  0xbb   : > { %v427_v35 = vld [vmem:[%s3062_s25 + $0x310] sm:$0xff]  ;;  %v434_v43 = vld [vmem:[%s3062_s25 + $0x348] sm:$0xff]  ;;  %v436_v44 = vld [vmem:[%s3062_s25 + $0x358] sm:$0xff] }
  0xbc   : > { %2003 = vmatpush1.bf16.msra.mxu0 %v2002_v58  ;;  %v402_v58 = vld [vmem:[%s3062_s25 + $0x248] sm:$0xff]  ;;  %v2070_v38 = vpack.c.bf16 %v427_v35, %v425_v33  ;;  %v431_v41 = vld [vmem:[%s3062_s25 + $0x330] sm:$0xff]  ;;  %v433_v49 = vld [vmem:[%s3062_s25 + $0x340] sm:$0xff] }
  0xbd   : > { %2005 = vmatprep.subr.bf16.mxu0 %v2004_v59  ;;  %v404_v59 = vld [vmem:[%s3062_s25 + $0x258] sm:$0xff]  ;;  %v435_v51 = vld [vmem:[%s3062_s25 + $0x350] sm:$0xff]  ;;  %v438_v47 = vld [vmem:[%s3062_s25 + $0x368] sm:$0xff] }
  0xbe   : > { %v2044_v61 = vpack.c.bf16 %v404_v59, %v402_v58  ;;  %v440_v52 = vld [vmem:[%s3062_s25 + $0x378] sm:$0xff]  ;;  %v439_v56 = vld [vmem:[%s3062_s25 + $0x370] sm:$0xff]  ;;  %v442_v57 = vld [vmem:[%s3062_s25 + $0x388] sm:$0xff] }
  0xbf   : > { %v444_v58 = vld [vmem:[%s3062_s25 + $0x398] sm:$0xff]  ;;  %v443_v62 = vld [vmem:[%s3062_s25 + $0x390] sm:$0xff]  ;;  %v446_v63 = vld [vmem:[%s3062_s25 + $0x3a8] sm:$0xff] }
  0xc0   : > { %2007 = vmatpush1.bf16.msra.mxu0 %v2006_v0  ;;  %v406_v0 = vld [vmem:[%s3062_s25 + $0x268] sm:$0xff]  ;;  %v465_v33 = vld [vmem:[%s3062_s25 + $0x440] sm:$0xff]  ;;  %v467_v35 = vld [vmem:[%s3062_s25 + $0x450] sm:$0xff] }
  0xc1   : > { %2009 = vmatprep.subr.bf16.mxu0 %v2008_v1  ;;  %v408_v1 = vld [vmem:[%s3062_s25 + $0x278] sm:$0xff] }
  0xc2   : > { %v2048_v3 = vpack.c.bf16 %v408_v1, %v406_v0  ;;  %v448_v0 = vld [vmem:[%s3062_s25 + $0x3b8] sm:$0xff] }
  0xc4   : > { %2011 = vmatpush1.bf16.msra.mxu0 %v2010_v6  ;;  %v412_v6 = vld [vmem:[%s3062_s25 + $0x298] sm:$0xff] }
  0xc5   : > { %2013 = vmatprep.subr.bf16.mxu0 %v2012_v7  ;;  %v2052_v8 = vpack.c.bf16 %v412_v6, %v410_v5  ;;  %v452_v5 = vld [vmem:[%s3062_s25 + $0x3d8] sm:$0xff] }
  0xc8   : > { %2015 = vmatpush1.bf16.msra.mxu0 %v2014_v12  ;;  %v416_v12 = vld [vmem:[%s3062_s25 + $0x2b8] sm:$0xff] }
  0xc9   : > { %2017 = vmatprep.subr.bf16.mxu0 %v2016_v13  ;;  %v2054_v13 = vpack.c.bf16 %v411_v10, %v409_v9  ;;  %v2056_v14 = vpack.c.bf16 %v416_v12, %v414_v11  ;;  %v451_v9 = vld [vmem:[%s3062_s25 + $0x3d0] sm:$0xff]  ;;  %v454_v10 = vld [vmem:[%s3062_s25 + $0x3e8] sm:$0xff]  ;;  %v456_v11 = vld [vmem:[%s3062_s25 + $0x3f8] sm:$0xff] }
  0xcc   : > { %2019 = vmatpush1.bf16.msra.mxu0 %v2018_v18  ;;  %v420_v18 = vld [vmem:[%s3062_s25 + $0x2d8] sm:$0xff] }
  0xcd   : > { %2021 = vmatprep.subr.bf16.mxu0 %v2020_v19  ;;  %v2058_v19 = vpack.c.bf16 %v415_v16, %v413_v15  ;;  %v2060_v20 = vpack.c.bf16 %v420_v18, %v418_v17  ;;  %v455_v15 = vld [vmem:[%s3062_s25 + $0x3f0] sm:$0xff]  ;;  %v3228_v16 = vld [vmem:[#allocation2 + $0x8] sm:$0xff]  ;;  %v458_v17 = vld [vmem:[%s3062_s25 + $0x408] sm:$0xff] }
  0xce   : > { %v460_v18 = vld [vmem:[%s3062_s25 + $0x418] sm:$0xff] }
  0xd0   : > { %2023 = vmatpush1.bf16.msra.mxu0 %v2022_v24  ;;  %v424_v24 = vld [vmem:[%s3062_s25 + $0x2f8] sm:$0xff] }
  0xd1   : > { %2025 = vmatprep.subr.bf16.mxu0 %v2024_v25  ;;  %v2062_v25 = vpack.c.bf16 %v419_v22, %v417_v21  ;;  %v2064_v26 = vpack.c.bf16 %v424_v24, %v422_v23  ;;  %v2100_v21 = vpack.c.bf16 %v460_v18, %v458_v17  ;;  %v457_v22 = vld [vmem:[%s3062_s25 + $0x400] sm:$0xff]  ;;  %v459_v23 = vld [vmem:[%s3062_s25 + $0x410] sm:$0xff]  ;;  %v462_v24 = vld [vmem:[%s3062_s25 + $0x428] sm:$0xff] }
  0xd2   : > { %v477_v17 = vld [vmem:[%s3062_s25 + $0x4a0] sm:$0xff] }
  0xd4   : > { %2027 = vmatpush1.bf16.msra.mxu0 %v2026_v30  ;;  %v428_v30 = vld [vmem:[%s3062_s25 + $0x318] sm:$0xff] }
  0xd5   : > { %2029 = vmatprep.subr.bf16.mxu0 %v2028_v31  ;;  %v2066_v31 = vpack.c.bf16 %v423_v28, %v421_v27  ;;  %v2068_v32 = vpack.c.bf16 %v428_v30, %v426_v29  ;;  %v461_v29 = vld [vmem:[%s3062_s25 + $0x420] sm:$0xff]  ;;  %v463_v30 = vld [vmem:[%s3062_s25 + $0x430] sm:$0xff] }
  0xd8   : > { %2031 = vmatpush1.bf16.msra.mxu0 %v2030_v37  ;;  %v432_v37 = vld [vmem:[%s3062_s25 + $0x338] sm:$0xff] }
  0xd9   : > { %2033 = vmatprep.subr.bf16.mxu0 %v2032_v39  ;;  %v2072_v39 = vpack.c.bf16 %v432_v37, %v430_v36  ;;  %v928_v36 = vld [vmem:[%s3073_s30 + $0x8] sm:$0xff] }
  0xda   : > { %v936_v37 = vld [vmem:[%s3073_s30 + $0x48] sm:$0xff] }
  0xdc   : > { %2035 = vmatpush1.bf16.msra.mxu0 %v2034_v45  ;;  %v2074_v45 = vpack.c.bf16 %v431_v41, %v429_v40  ;;  %v3252_v40 = vpack.c.bf16 %v936_v37, %v928_v36  ;;  %v935_v41 = vld [vmem:[%s3073_s30 + $0x40] sm:$0xff]  ;;  %v483_v36 = vld [vmem:[%s3062_s25 + $0x4d0] sm:$0xff] }
  0xdd   : > { %2037 = vmatprep.subr.bf16.mxu0 %v2036_v48  ;;  %v2076_v48 = vpack.c.bf16 %v436_v44, %v434_v43  ;;  %v944_v43 = vld [vmem:[%s3073_s30 + $0x88] sm:$0xff] }
  0xde   : > { %v952_v44 = vld [vmem:[%s3073_s30 + $0xc8] sm:$0xff]  ;;  %2229 = vmatprep.subr.bf16.mxu1 %v3252_v40 }
  0xdf   : > { %706 = vmatmul.mubr.f32.vlgmr.msra.gmra.mrb[0].mxu0 %v3118_v50  ;;  %v405_v50 = vld [vmem:[%s3062_s25 + $0x260] sm:$0xff]  ;;  %v1024_v37 = vld [vmem:[%s3073_s30 + $0x308] sm:$0xff] }
  0xe0   : > { %2039 = vmatpush1.bf16.msra.mxu0 %v2038_v53  ;;  %776 = vmatprep.mubr.f32.mxu0 %v615_v54  ;;  %v2050_v7 = vpack.c.bf16 %v407_v4, %v405_v50  ;;  %v2078_v53 = vpack.c.bf16 %v435_v51, %v433_v49  ;;  %v2080_v54 = vpack.c.bf16 %v440_v52, %v438_v47  ;;  %v447_v50 = vld [vmem:[%s3062_s25 + $0x3b0] sm:$0xff]  ;;  %v450_v4 = vld [vmem:[%s3062_s25 + $0x3c8] sm:$0xff] }
  0xe1   : > { %2041 = vmatprep.subr.bf16.mxu0 %v2040_v55  ;;  %v437_v55 = vld [vmem:[%s3062_s25 + $0x360] sm:$0xff]  ;;  %v960_v47 = vld [vmem:[%s3073_s30 + $0x108] sm:$0xff] }
  0xe2   : > { %v2082_v59 = vpack.c.bf16 %v439_v56, %v437_v55  ;;  %v943_v49 = vld [vmem:[%s3073_s30 + $0x80] sm:$0xff]  ;;  %v2110_v56 = vpack.c.bf16 %v467_v35, %v465_v33 }
  0xe3   : > { %v951_v51 = vld [vmem:[%s3073_s30 + $0xc0] sm:$0xff] }
  0xe4   : > { %2043 = vmatpush1.bf16.msra.mxu0 %v2042_v60  ;;  %v2084_v60 = vpack.c.bf16 %v444_v58, %v442_v57  ;;  %v470_v52 = vld [vmem:[%s3062_s25 + $0x468] sm:$0xff]  ;;  %v3269_v55 = vpack.c.bf16 %v951_v51, %v943_v49  ;;  %v469_v57 = vld [vmem:[%s3062_s25 + $0x460] sm:$0xff] }
  0xe5   : > { %2045 = vmatprep.subr.bf16.mxu0 %v2044_v61  ;;  %v441_v61 = vld [vmem:[%s3062_s25 + $0x380] sm:$0xff] }
  0xe6   : > { %v2086_v1 = vpack.c.bf16 %v443_v62, %v441_v61  ;;  %v471_v62 = vld [vmem:[%s3062_s25 + $0x470] sm:$0xff]  ;;  %v1015_v33 = vld [vmem:[%s3073_s30 + $0x2c0] sm:$0xff] }
  0xe7   : > { %v1023_v49 = vld [vmem:[%s3073_s30 + $0x300] sm:$0xff] }
  0xe8   : > { %2047 = vmatpush1.bf16.msra.mxu0 %v2046_v2  ;;  %v2088_v2 = vpack.c.bf16 %v448_v0, %v446_v63  ;;  %v976_v63 = vld [vmem:[%s3073_s30 + $0x188] sm:$0xff]  ;;  %v1031_v51 = vld [vmem:[%s3073_s30 + $0x340] sm:$0xff] }
  0xe9   : > { %2049 = vmatprep.subr.bf16.mxu0 %v2048_v3  ;;  %v445_v3 = vld [vmem:[%s3062_s25 + $0x3a0] sm:$0xff]  ;;  %v984_v0 = vld [vmem:[%s3073_s30 + $0x1c8] sm:$0xff] }
  0xea   : > { %v2090_v6 = vpack.c.bf16 %v447_v50, %v445_v3  ;;  %v2114_v50 = vpack.c.bf16 %v471_v62, %v469_v57  ;;  %v3337_v57 = vpack.c.bf16 %v1031_v51, %v1023_v49  ;;  %v491_v62 = vld [vmem:[%s3062_s25 + $0x510] sm:$0xff]  ;;  %v518_v51 = vld [vmem:[%s3062_s25 + $0x5e8] sm:$0xff] }
  0xeb   : > { %v515_v49 = vld [vmem:[%s3062_s25 + $0x5d0] sm:$0xff] }
  0xec   : > { %2051 = vmatpush1.bf16.msra.mxu0 %v2050_v7  ;;  %v2092_v7 = vpack.c.bf16 %v452_v5, %v450_v4  ;;  %v473_v4 = vld [vmem:[%s3062_s25 + $0x480] sm:$0xff]  ;;  %v3287_v5 = vpack.c.bf16 %v984_v0, %v976_v63  ;;  %v494_v63 = vld [vmem:[%s3062_s25 + $0x528] sm:$0xff]  ;;  %v496_v0 = vld [vmem:[%s3062_s25 + $0x538] sm:$0xff] }
  0xed   : > { %2053 = vmatprep.subr.bf16.mxu0 %v2052_v8  ;;  %v449_v8 = vld [vmem:[%s3062_s25 + $0x3c0] sm:$0xff] }
  0xee   : > { %v2094_v12 = vpack.c.bf16 %v451_v9, %v449_v8  ;;  %v475_v9 = vld [vmem:[%s3062_s25 + $0x490] sm:$0xff] }
  0xf0   : > { %2055 = vmatpush1.bf16.msra.mxu0 %v2054_v13  ;;  %v2096_v13 = vpack.c.bf16 %v456_v11, %v454_v10  ;;  %v992_v10 = vld [vmem:[%s3073_s30 + $0x208] sm:$0xff] }
  0xf1   : > { %2057 = vmatprep.subr.bf16.mxu0 %v2056_v14  ;;  %v453_v14 = vld [vmem:[%s3062_s25 + $0x3e0] sm:$0xff]  ;;  %v1000_v11 = vld [vmem:[%s3073_s30 + $0x248] sm:$0xff] }
  0xf2   : > { %v3301_v18 = vpack.c.bf16 %v1000_v11, %v992_v10  ;;  %v497_v10 = vld [vmem:[%s3062_s25 + $0x540] sm:$0xff]  ;;  %v499_v11 = vld [vmem:[%s3062_s25 + $0x550] sm:$0xff] }
  0xf4   : > { %2059 = vmatpush1.bf16.msra.mxu0 %v2058_v19  ;;  %v2098_v19 = vpack.c.bf16 %v455_v15, %v453_v14  ;;  %v2118_v15 = vpack.c.bf16 %v475_v9, %v473_v4  ;;  %v495_v4 = vld [vmem:[%s3062_s25 + $0x530] sm:$0xff] }
  0xf5   : > { %2061 = vmatprep.subr.bf16.mxu0 %v2060_v20  ;;  %v3234_v20 = vrot.slane %v3228_v16, %v3108_v42 }
  0xf7   : > { %v631_v27 = vcombine.high %v3234_v20, %v3234_v20 }
  0xf8   : > { %2063 = vmatpush1.bf16.msra.mxu0 %v2062_v25  ;;  %v464_v25 = vld [vmem:[%s3062_s25 + $0x438] sm:$0xff] }
  0xf9   : > { %2065 = vmatprep.subr.bf16.mxu0 %v2064_v26  ;;  %v2102_v26 = vpack.c.bf16 %v459_v23, %v457_v22  ;;  %v2104_v28 = vpack.c.bf16 %v464_v25, %v462_v24  ;;  %v479_v23 = vld [vmem:[%s3062_s25 + $0x4b0] sm:$0xff] }
  0xfa   : > { %v1008_v24 = vld [vmem:[%s3073_s30 + $0x288] sm:$0xff] }
  0xfb   : > { %v1016_v25 = vld [vmem:[%s3073_s30 + $0x2c8] sm:$0xff] }
  0xfc   : > { %2067 = vmatpush1.bf16.msra.mxu0 %v2066_v31  ;;  %v466_v31 = vld [vmem:[%s3062_s25 + $0x448] sm:$0xff] }
  0xfd   : > { %2069 = vmatprep.subr.bf16.mxu0 %v2068_v32  ;;  %v468_v32 = vld [vmem:[%s3062_s25 + $0x458] sm:$0xff] }
 0x100   : > { %2071 = vmatpush1.bf16.msra.mxu0 %v2070_v38  ;;  %v927_v38 = vld [vmem:[%s3073_s30] sm:$0xff] }
 0x101   : > { %2073 = vmatprep.subr.bf16.mxu0 %v2072_v39  ;;  %v2106_v39 = vpack.c.bf16 %v463_v30, %v461_v29  ;;  %v2122_v29 = vpack.c.bf16 %v479_v23, %v477_v17  ;;  %v481_v30 = vld [vmem:[%s3062_s25 + $0x4c0] sm:$0xff]  ;;  %v508_v23 = vld [vmem:[%s3062_s25 + $0x598] sm:$0xff] }
 0x104   : > { %2075 = vmatpush1.bf16.msra.mxu0 %v2074_v45  ;;  %v3257_v45 = vpack.c.bf16 %v935_v41, %v927_v38  ;;  %v1032_v38 = vld [vmem:[%s3073_s30 + $0x348] sm:$0xff]  ;;  %v488_v41 = vld [vmem:[%s3062_s25 + $0x4f8] sm:$0xff] }
 0x105   : > { %2077 = vmatprep.subr.bf16.mxu0 %v2076_v48  ;;  %v3259_v48 = vpack.c.bf16 %v952_v44, %v944_v43  ;;  %v2126_v44 = vpack.c.bf16 %v483_v36, %v481_v30  ;;  %v512_v30 = vld [vmem:[%s3062_s25 + $0x5b8] sm:$0xff]  ;;  %v511_v36 = vld [vmem:[%s3062_s25 + $0x5b0] sm:$0xff] }
 0x106   : > { %2231 = vmatpush1.bf16.msra.mxu1 %v3257_v45 }
 0x107   : > { %2233 = vmatprep.subr.bf16.mxu1 %v3259_v48 }
 0x108   : > { %2079 = vmatpush1.bf16.msra.mxu0 %v2078_v53  ;;  %v472_v53 = vld [vmem:[%s3062_s25 + $0x478] sm:$0xff] }
 0x109   : > { %2081 = vmatprep.subr.bf16.mxu0 %v2080_v54  ;;  %v968_v54 = vld [vmem:[%s3073_s30 + $0x148] sm:$0xff]  ;;  %v2112_v61 = vpack.c.bf16 %v472_v53, %v470_v52  ;;  %v485_v52 = vld [vmem:[%s3062_s25 + $0x4e0] sm:$0xff] }
 0x10a   : > { %v3273_v58 = vpack.c.bf16 %v968_v54, %v960_v47  ;;  %2235 = vmatpush1.bf16.msra.mxu1 %v3269_v55  ;;  %v487_v53 = vld [vmem:[%s3062_s25 + $0x4f0] sm:$0xff]  ;;  %v490_v54 = vld [vmem:[%s3062_s25 + $0x508] sm:$0xff] }
 0x10c   : > { %2083 = vmatpush1.bf16.msra.mxu0 %v2082_v59  ;;  %v959_v59 = vld [vmem:[%s3073_s30 + $0x100] sm:$0xff]  ;;  %2237 = vmatprep.subr.bf16.mxu1 %v3273_v58 }
 0x10d   : > { %2085 = vmatprep.subr.bf16.mxu0 %v2084_v60  ;;  %v967_v60 = vld [vmem:[%s3073_s30 + $0x140] sm:$0xff] }
 0x10e   : > { %v3283_v3 = vpack.c.bf16 %v967_v60, %v959_v59  ;;  %v2130_v59 = vpack.c.bf16 %v487_v53, %v485_v52  ;;  %v616_v53 = vcombine.high %v3228_v16, %v3228_v16  ;;  %v526_v16 = vld [vmem:[%s3062_s25 + $0x628] sm:$0xff] }
 0x110   : > { %2087 = vmatpush1.bf16.msra.mxu0 %v2086_v1  ;;  %v474_v1 = vld [vmem:[%s3062_s25 + $0x488] sm:$0xff]  ;;  %2239 = vmatpush1.bf16.msra.mxu1 %v3283_v3 }
 0x111   : > { %2089 = vmatprep.subr.bf16.mxu0 %v2088_v2  ;;  %v476_v2 = vld [vmem:[%s3062_s25 + $0x498] sm:$0xff]  ;;  %2241 = vmatprep.subr.bf16.mxu1 %v3287_v5 }
 0x112   : > { %v2116_v8 = vpack.c.bf16 %v476_v2, %v474_v1  ;;  %v2136_v2 = vpack.c.bf16 %v496_v0, %v494_v63  ;;  %v3376_v63 = vrot.slane %v616_v53, %v3108_v42  ;;  %v527_v42 = vld [vmem:[%s3062_s25 + $0x630] sm:$0xff]  ;;  %v552_v53 = vld [vmem:[%s3062_s25 + $0x6f8] sm:$0xff] }
 0x114   : > { %2091 = vmatpush1.bf16.msra.mxu0 %v2090_v6  ;;  %v975_v6 = vld [vmem:[%s3073_s30 + $0x180] sm:$0xff] }
 0x115   : > { %2093 = vmatprep.subr.bf16.mxu0 %v2092_v7  ;;  %v983_v7 = vld [vmem:[%s3073_s30 + $0x1c0] sm:$0xff] }
 0x116   : > { %v3297_v14 = vpack.c.bf16 %v983_v7, %v975_v6  ;;  %v498_v6 = vld [vmem:[%s3062_s25 + $0x548] sm:$0xff]  ;;  %v500_v7 = vld [vmem:[%s3062_s25 + $0x558] sm:$0xff] }
 0x117   : > { %v2140_v9 = vpack.c.bf16 %v500_v7, %v498_v6  ;;  %v632_v6 = vcombine.high %v3376_v63, %v3376_v63 }
 0x118   : > { %2095 = vmatpush1.bf16.msra.mxu0 %v2094_v12  ;;  %v478_v12 = vld [vmem:[%s3062_s25 + $0x4a8] sm:$0xff]  ;;  %2243 = vmatpush1.bf16.msra.mxu1 %v3297_v14 }
 0x119   : > { %2097 = vmatprep.subr.bf16.mxu0 %v2096_v13  ;;  %v480_v13 = vld [vmem:[%s3062_s25 + $0x4b8] sm:$0xff]  ;;  %2245 = vmatprep.subr.bf16.mxu1 %v3301_v18 }
 0x11a   : > { %v2120_v22 = vpack.c.bf16 %v480_v13, %v478_v12  ;;  %v502_v12 = vld [vmem:[%s3062_s25 + $0x568] sm:$0xff]  ;;  %v504_v13 = vld [vmem:[%s3062_s25 + $0x578] sm:$0xff] }
 0x11b   : > { %v2144_v17 = vpack.c.bf16 %v504_v13, %v502_v12  ;;  %v529_v13 = vld [vmem:[%s3062_s25 + $0x640] sm:$0xff] }
 0x11c   : > { %2099 = vmatpush1.bf16.msra.mxu0 %v2098_v19  ;;  %v991_v19 = vld [vmem:[%s3073_s30 + $0x200] sm:$0xff] }
 0x11d   : > { %2101 = vmatprep.subr.bf16.mxu0 %v2100_v21  ;;  %v999_v21 = vld [vmem:[%s3073_s30 + $0x240] sm:$0xff] }
 0x11f   : > { %777 = vmatmul.mubr.f32.vlgmr.msra.gmra.mrb[0].mxu0 %v3161_v46  ;;  %v2108_v46 = vpack.c.bf16 %v468_v32, %v466_v31  ;;  %v3315_v31 = vpack.c.bf16 %v1016_v25, %v1008_v24  ;;  %v1007_v32 = vld [vmem:[%s3073_s30 + $0x280] sm:$0xff] }
 0x120   : > { %2103 = vmatpush1.bf16.msra.mxu0 %v2102_v26  ;;  %847 = vmatprep.mubr.f32.mxu0 %v631_v27  ;;  %v482_v26 = vld [vmem:[%s3062_s25 + $0x4c8] sm:$0xff]  ;;  %v484_v27 = vld [vmem:[%s3062_s25 + $0x4d8] sm:$0xff]  ;;  %v3325_v43 = vpack.c.bf16 %v1015_v33, %v1007_v32 }
 0x121   : > { %2105 = vmatprep.subr.bf16.mxu0 %v2104_v28  ;;  %v3311_v28 = vpack.c.bf16 %v999_v21, %v991_v19  ;;  %v2124_v35 = vpack.c.bf16 %v484_v27, %v482_v26  ;;  %v501_v19 = vld [vmem:[%s3062_s25 + $0x560] sm:$0xff]  ;;  %v503_v21 = vld [vmem:[%s3062_s25 + $0x570] sm:$0xff] }
 0x122   : > { %v2146_v24 = vpack.c.bf16 %v503_v21, %v501_v19  ;;  %v505_v26 = vld [vmem:[%s3062_s25 + $0x580] sm:$0xff]  ;;  %v507_v27 = vld [vmem:[%s3062_s25 + $0x590] sm:$0xff]  ;;  %v536_v19 = vld [vmem:[%s3062_s25 + $0x678] sm:$0xff] }
 0x123   : > { %2247 = vmatpush1.bf16.msra.mxu1 %v3311_v28  ;;  %v2150_v32 = vpack.c.bf16 %v507_v27, %v505_v26 }
 0x124   : > { %2107 = vmatpush1.bf16.msra.mxu0 %v2106_v39  ;;  %v486_v39 = vld [vmem:[%s3062_s25 + $0x4e8] sm:$0xff]  ;;  %2249 = vmatprep.subr.bf16.mxu1 %v3315_v31 }
 0x125   : > { %2109 = vmatprep.subr.bf16.mxu0 %v2108_v46  ;;  %v3328_v46 = vpack.c.bf16 %v1032_v38, %v1024_v37  ;;  %v2128_v47 = vpack.c.bf16 %v488_v41, %v486_v39  ;;  %v514_v37 = vld [vmem:[%s3062_s25 + $0x5c8] sm:$0xff]  ;;  %v516_v38 = vld [vmem:[%s3062_s25 + $0x5d8] sm:$0xff] }
 0x126   : > { %v2156_v41 = vpack.c.bf16 %v516_v38, %v514_v37  ;;  %v541_v37 = vld [vmem:[%s3062_s25 + $0x6a0] sm:$0xff]  ;;  %v543_v38 = vld [vmem:[%s3062_s25 + $0x6b0] sm:$0xff] }
 0x127   : > { %2251 = vmatpush1.bf16.msra.mxu1 %v3325_v43 }
 0x128   : > { %2111 = vmatpush1.bf16.msra.mxu0 %v2110_v56  ;;  %v492_v56 = vld [vmem:[%s3062_s25 + $0x518] sm:$0xff]  ;;  %2253 = vmatprep.subr.bf16.mxu1 %v3328_v46 }
 0x129   : > { %2113 = vmatprep.subr.bf16.mxu0 %v2112_v61  ;;  %v2132_v60 = vpack.c.bf16 %v492_v56, %v490_v54  ;;  %v489_v61 = vld [vmem:[%s3062_s25 + $0x500] sm:$0xff] }
 0x12a   : > { %v2134_v1 = vpack.c.bf16 %v491_v62, %v489_v61  ;;  %v517_v56 = vld [vmem:[%s3062_s25 + $0x5e0] sm:$0xff]  ;;  %v524_v61 = vld [vmem:[%s3062_s25 + $0x618] sm:$0xff] }
 0x12b   : > { %2255 = vmatpush1.bf16.msra.mxu1 %v3337_v57 }
 0x12c   : > { %2115 = vmatpush1.bf16.msra.mxu0 %v2114_v50  ;;  %v493_v50 = vld [vmem:[%s3062_s25 + $0x520] sm:$0xff] }
 0x12d   : > { %2117 = vmatprep.subr.bf16.mxu0 %v2116_v8  ;;  %v2138_v8 = vpack.c.bf16 %v495_v4, %v493_v50  ;;  %v528_v50 = vld [vmem:[%s3062_s25 + $0x638] sm:$0xff] }
 0x12e   : > { %v2168_v7 = vpack.c.bf16 %v528_v50, %v526_v16  ;;  %v555_v16 = vld [vmem:[%s3062_s25 + $0x710] sm:$0xff]  ;;  %v558_v50 = vld [vmem:[%s3062_s25 + $0x728] sm:$0xff] }
 0x130   : > { %2119 = vmatpush1.bf16.msra.mxu0 %v2118_v15  ;;  %v2142_v15 = vpack.c.bf16 %v499_v11, %v497_v10  ;;  %v532_v10 = vld [vmem:[%s3062_s25 + $0x658] sm:$0xff] }
 0x131   : > { %2121 = vmatprep.subr.bf16.mxu0 %v2120_v22  ;;  %v506_v22 = vld [vmem:[%s3062_s25 + $0x588] sm:$0xff] }
 0x132   : > { %v2148_v25 = vpack.c.bf16 %v508_v23, %v506_v22  ;;  %v535_v23 = vld [vmem:[%s3062_s25 + $0x670] sm:$0xff] }
 0x134   : > { %2123 = vmatpush1.bf16.msra.mxu0 %v2122_v29  ;;  %v510_v29 = vld [vmem:[%s3062_s25 + $0x5a8] sm:$0xff] }
 0x135   : > { %2125 = vmatprep.subr.bf16.mxu0 %v2124_v35  ;;  %v2152_v33 = vpack.c.bf16 %v512_v30, %v510_v29  ;;  %v509_v35 = vld [vmem:[%s3062_s25 + $0x5a0] sm:$0xff]  ;;  %v539_v30 = vld [vmem:[%s3062_s25 + $0x690] sm:$0xff] }
 0x136   : > { %v2154_v39 = vpack.c.bf16 %v511_v36, %v509_v35  ;;  %v537_v29 = vld [vmem:[%s3062_s25 + $0x680] sm:$0xff] }
 0x137   : > { %v2182_v35 = vpack.c.bf16 %v539_v30, %v537_v29  ;;  %v569_v29 = vld [vmem:[%s3062_s25 + $0x780] sm:$0xff]  ;;  %v571_v30 = vld [vmem:[%s3062_s25 + $0x790] sm:$0xff] }
 0x138   : > { %2127 = vmatpush1.bf16.msra.mxu0 %v2126_v44  ;;  %v513_v44 = vld [vmem:[%s3062_s25 + $0x5c0] sm:$0xff] }
 0x139   : > { %2129 = vmatprep.subr.bf16.mxu0 %v2128_v47  ;;  %v520_v47 = vld [vmem:[%s3062_s25 + $0x5f8] sm:$0xff]  ;;  %v2158_v52 = vpack.c.bf16 %v515_v49, %v513_v44  ;;  %v2186_v44 = vpack.c.bf16 %v543_v38, %v541_v37  ;;  %v573_v37 = vld [vmem:[%s3062_s25 + $0x7a0] sm:$0xff]  ;;  %v575_v38 = vld [vmem:[%s3062_s25 + $0x7b0] sm:$0xff] }
 0x13a   : > { %v2160_v54 = vpack.c.bf16 %v520_v47, %v518_v51  ;;  %v545_v51 = vld [vmem:[%s3062_s25 + $0x6c0] sm:$0xff]  ;;  %v547_v47 = vld [vmem:[%s3062_s25 + $0x6d0] sm:$0xff] }
 0x13c   : > { %2131 = vmatpush1.bf16.msra.mxu0 %v2130_v59  ;;  %v519_v59 = vld [vmem:[%s3062_s25 + $0x5f0] sm:$0xff] }
 0x13d   : > { %2133 = vmatprep.subr.bf16.mxu0 %v2132_v60  ;;  %v522_v60 = vld [vmem:[%s3062_s25 + $0x608] sm:$0xff]  ;;  %v2162_v62 = vpack.c.bf16 %v519_v59, %v517_v56  ;;  %v549_v59 = vld [vmem:[%s3062_s25 + $0x6e0] sm:$0xff] }
 0x13e   : > { %v2164_v0 = vpack.c.bf16 %v524_v61, %v522_v60  ;;  %v551_v60 = vld [vmem:[%s3062_s25 + $0x6f0] sm:$0xff]  ;;  %v554_v61 = vld [vmem:[%s3062_s25 + $0x708] sm:$0xff] }
 0x140   : > { %2135 = vmatpush1.bf16.msra.mxu0 %v2134_v1  ;;  %v521_v1 = vld [vmem:[%s3062_s25 + $0x600] sm:$0xff] }
 0x141   : > { %2137 = vmatprep.subr.bf16.mxu0 %v2136_v2  ;;  %v523_v2 = vld [vmem:[%s3062_s25 + $0x610] sm:$0xff] }
 0x142   : > { %v2166_v4 = vpack.c.bf16 %v523_v2, %v521_v1  ;;  %v553_v2 = vld [vmem:[%s3062_s25 + $0x700] sm:$0xff] }
 0x144   : > { %2139 = vmatpush1.bf16.msra.mxu0 %v2138_v8  ;;  %v525_v8 = vld [vmem:[%s3062_s25 + $0x620] sm:$0xff] }
 0x145   : > { %2141 = vmatprep.subr.bf16.mxu0 %v2140_v9  ;;  %v530_v9 = vld [vmem:[%s3062_s25 + $0x648] sm:$0xff]  ;;  %v2170_v11 = vpack.c.bf16 %v527_v42, %v525_v8  ;;  %v557_v8 = vld [vmem:[%s3062_s25 + $0x720] sm:$0xff]  ;;  %v559_v42 = vld [vmem:[%s3062_s25 + $0x730] sm:$0xff] }
 0x146   : > { %v2172_v12 = vpack.c.bf16 %v532_v10, %v530_v9  ;;  %v562_v9 = vld [vmem:[%s3062_s25 + $0x748] sm:$0xff]  ;;  %v564_v10 = vld [vmem:[%s3062_s25 + $0x758] sm:$0xff] }
 0x148   : > { %2143 = vmatpush1.bf16.msra.mxu0 %v2142_v15  ;;  %v531_v15 = vld [vmem:[%s3062_s25 + $0x650] sm:$0xff] }
 0x149   : > { %2145 = vmatprep.subr.bf16.mxu0 %v2144_v17  ;;  %v534_v17 = vld [vmem:[%s3062_s25 + $0x668] sm:$0xff]  ;;  %v2174_v21 = vpack.c.bf16 %v531_v15, %v529_v13  ;;  %v561_v13 = vld [vmem:[%s3062_s25 + $0x740] sm:$0xff]  ;;  %v563_v15 = vld [vmem:[%s3062_s25 + $0x750] sm:$0xff] }
 0x14a   : > { %v2176_v22 = vpack.c.bf16 %v536_v19, %v534_v17  ;;  %v566_v17 = vld [vmem:[%s3062_s25 + $0x768] sm:$0xff]  ;;  %v568_v19 = vld [vmem:[%s3062_s25 + $0x778] sm:$0xff] }
 0x14c   : > { %2147 = vmatpush1.bf16.msra.mxu0 %v2146_v24  ;;  %v538_v24 = vld [vmem:[%s3062_s25 + $0x688] sm:$0xff] }
 0x14d   : > { %2149 = vmatprep.subr.bf16.mxu0 %v2148_v25  ;;  %v540_v25 = vld [vmem:[%s3062_s25 + $0x698] sm:$0xff] }
 0x14e   : > { %v2180_v27 = vpack.c.bf16 %v540_v25, %v538_v24  ;;  %v570_v24 = vld [vmem:[%s3062_s25 + $0x788] sm:$0xff]  ;;  %v572_v25 = vld [vmem:[%s3062_s25 + $0x798] sm:$0xff] }
 0x150   : > { %2151 = vmatpush1.bf16.msra.mxu0 %v2150_v32  ;;  %v542_v32 = vld [vmem:[%s3062_s25 + $0x6a8] sm:$0xff] }
 0x151   : > { %2153 = vmatprep.subr.bf16.mxu0 %v2152_v33  ;;  %v544_v33 = vld [vmem:[%s3062_s25 + $0x6b8] sm:$0xff] }
 0x152   : > { %v2184_v36 = vpack.c.bf16 %v544_v33, %v542_v32  ;;  %v574_v32 = vld [vmem:[%s3062_s25 + $0x7a8] sm:$0xff]  ;;  %v576_v33 = vld [vmem:[%s3062_s25 + $0x7b8] sm:$0xff] }
 0x154   : > { %2155 = vmatpush1.bf16.msra.mxu0 %v2154_v39  ;;  %v546_v39 = vld [vmem:[%s3062_s25 + $0x6c8] sm:$0xff] }
 0x155   : > { %2157 = vmatprep.subr.bf16.mxu0 %v2156_v41  ;;  %v548_v41 = vld [vmem:[%s3062_s25 + $0x6d8] sm:$0xff] }
 0x156   : > { %v2188_v49 = vpack.c.bf16 %v548_v41, %v546_v39  ;;  %v578_v39 = vld [vmem:[%s3062_s25 + $0x7c8] sm:$0xff]  ;;  %v580_v41 = vld [vmem:[%s3062_s25 + $0x7d8] sm:$0xff] }
 0x158   : > { %2159 = vmatpush1.bf16.msra.mxu0 %v2158_v52  ;;  %v550_v52 = vld [vmem:[%s3062_s25 + $0x6e8] sm:$0xff] }
 0x159   : > { %2161 = vmatprep.subr.bf16.mxu0 %v2160_v54  ;;  %v2190_v54 = vpack.c.bf16 %v547_v47, %v545_v51  ;;  %v2192_v56 = vpack.c.bf16 %v552_v53, %v550_v52  ;;  %v577_v51 = vld [vmem:[%s3062_s25 + $0x7c0] sm:$0xff]  ;;  %v579_v47 = vld [vmem:[%s3062_s25 + $0x7d0] sm:$0xff]  ;;  %v582_v52 = vld [vmem:[%s3062_s25 + $0x7e8] sm:$0xff] }
 0x15a   : > { %v584_v53 = vld [vmem:[%s3062_s25 + $0x7f8] sm:$0xff] }
 0x15c   : > { %2163 = vmatpush1.bf16.msra.mxu0 %v2162_v62  ;;  %v556_v62 = vld [vmem:[%s3062_s25 + $0x718] sm:$0xff] }
 0x15d   : > { %2165 = vmatprep.subr.bf16.mxu0 %v2164_v0  ;;  %v2194_v0 = vpack.c.bf16 %v551_v60, %v549_v59  ;;  %v2196_v1 = vpack.c.bf16 %v556_v62, %v554_v61  ;;  %v581_v59 = vld [vmem:[%s3062_s25 + $0x7e0] sm:$0xff]  ;;  %v583_v60 = vld [vmem:[%s3062_s25 + $0x7f0] sm:$0xff] }
 0x15e   : > { %v2226_v61 = vpack.c.bf16 %v583_v60, %v581_v59  ;;  %v1040_v62 = vld [vmem:[%s3073_s30 + $0x388] sm:$0xff]  ;;  %v1009_v60 = vld [vmem:[%s3073_s30 + $0x290] sm:$0xff] }
 0x15f   : > { %848 = vmatmul.mubr.f32.vlgmr.msra.gmra.mrb[0].mxu0 %v3234_v20  ;;  %v533_v20 = vld [vmem:[%s3062_s25 + $0x660] sm:$0xff] }
 0x160   : > { %2167 = vmatpush1.bf16.msra.mxu0 %v2166_v4  ;;  %918 = vmatprep.mubr.f32.mxu0 %v632_v6  ;;  %v2178_v26 = vpack.c.bf16 %v535_v23, %v533_v20  ;;  %v560_v4 = vld [vmem:[%s3062_s25 + $0x738] sm:$0xff]  ;;  %v2198_v6 = vpack.c.bf16 %v555_v16, %v553_v2  ;;  %v565_v20 = vld [vmem:[%s3062_s25 + $0x760] sm:$0xff]  ;;  %v567_v23 = vld [vmem:[%s3062_s25 + $0x770] sm:$0xff] }
 0x161   : > { %2169 = vmatprep.subr.bf16.mxu0 %v2168_v7  ;;  %v2200_v7 = vpack.c.bf16 %v560_v4, %v558_v50  ;;  %v1039_v2 = vld [vmem:[%s3073_s30 + $0x380] sm:$0xff]  ;;  %v930_v4 = vld [vmem:[%s3073_s30 + $0x18] sm:$0xff] }
 0x162   : > { %v1047_v16 = vld [vmem:[%s3073_s30 + $0x3c0] sm:$0xff] }
 0x163   : > { %v3450_v50 = vpack.c.bf16 %v1047_v16, %v1039_v2 }
 0x164   : > { %2171 = vmatpush1.bf16.msra.mxu0 %v2170_v11  ;;  %v2202_v11 = vpack.c.bf16 %v559_v42, %v557_v8  ;;  %v589_v8 = vsub.s32 0, %v3101_v34  ;;  %v3462_v42 = vld [vmem:[%s3070_s28] sm:$0x3] }
 0x165   : > { %2173 = vmatprep.subr.bf16.mxu0 %v2172_v12  ;;  %v2204_v12 = vpack.c.bf16 %v564_v10, %v562_v9  ;;  %v929_v10 = vld [vmem:[%s3073_s30 + $0x10] sm:$0xff] }
 0x166   : > { %v590_v9 = vrot.slane %v3462_v42, %v589_v8  ;;  %v1042_v8 = vld [vmem:[%s3073_s30 + $0x398] sm:$0xff] }
 0x168   : > { %2175 = vmatpush1.bf16.msra.mxu0 %v2174_v21  ;;  %v2206_v21 = vpack.c.bf16 %v563_v15, %v561_v13  ;;  %v946_v13 = vld [vmem:[%s3073_s30 + $0x98] sm:$0xff] }
 0x169   : > { %2177 = vmatprep.subr.bf16.mxu0 %v2176_v22  ;;  %v2208_v22 = vpack.c.bf16 %v568_v19, %v566_v17  ;;  %v954_v15 = vld [vmem:[%s3073_s30 + $0xd8] sm:$0xff] }
 0x16c   : > { %2179 = vmatpush1.bf16.msra.mxu0 %v2178_v26  ;;  %v2210_v26 = vpack.c.bf16 %v567_v23, %v565_v20  ;;  %v3475_v20 = vpack.c.bf16 %v954_v15, %v946_v13  ;;  %v945_v23 = vld [vmem:[%s3073_s30 + $0x90] sm:$0xff]  ;;  %v932_v15 = vld [vmem:[%s3073_s30 + $0x28] sm:$0xff] }
 0x16d   : > { %2181 = vmatprep.subr.bf16.mxu0 %v2180_v27  ;;  %v2212_v27 = vpack.c.bf16 %v572_v25, %v570_v24  ;;  %v953_v24 = vld [vmem:[%s3073_s30 + $0xd0] sm:$0xff]  ;;  %v962_v25 = vld [vmem:[%s3073_s30 + $0x118] sm:$0xff] }
 0x16e   : > { %v1049_v13 = vld [vmem:[%s3073_s30 + $0x3d0] sm:$0xff] }
 0x170   : > { %2183 = vmatpush1.bf16.msra.mxu0 %v2182_v35  ;;  %v2214_v35 = vpack.c.bf16 %v571_v30, %v569_v29  ;;  %v961_v30 = vld [vmem:[%s3073_s30 + $0x110] sm:$0xff] }
 0x171   : > { %2185 = vmatprep.subr.bf16.mxu0 %v2184_v36  ;;  %v2216_v36 = vpack.c.bf16 %v576_v33, %v574_v32  ;;  %v969_v32 = vld [vmem:[%s3073_s30 + $0x150] sm:$0xff]  ;;  %v978_v33 = vld [vmem:[%s3073_s30 + $0x198] sm:$0xff] }
 0x174   : > { %2187 = vmatpush1.bf16.msra.mxu0 %v2186_v44  ;;  %v2218_v44 = vpack.c.bf16 %v575_v38, %v573_v37  ;;  %v977_v38 = vld [vmem:[%s3073_s30 + $0x190] sm:$0xff] }
 0x175   : > { %2189 = vmatprep.subr.bf16.mxu0 %v2188_v49  ;;  %v2220_v49 = vpack.c.bf16 %v580_v41, %v578_v39  ;;  %v985_v39 = vld [vmem:[%s3073_s30 + $0x1d0] sm:$0xff]  ;;  %v994_v41 = vld [vmem:[%s3073_s30 + $0x218] sm:$0xff] }
 0x178   : > { %2191 = vmatpush1.bf16.msra.mxu0 %v2190_v54  ;;  %v2222_v54 = vpack.c.bf16 %v579_v47, %v577_v51  ;;  %v993_v47 = vld [vmem:[%s3073_s30 + $0x210] sm:$0xff] }
 0x179   : > { %2193 = vmatprep.subr.bf16.mxu0 %v2192_v56  ;;  %v2224_v56 = vpack.c.bf16 %v584_v53, %v582_v52  ;;  %v1001_v52 = vld [vmem:[%s3073_s30 + $0x250] sm:$0xff]  ;;  %v1010_v53 = vld [vmem:[%s3073_s30 + $0x298] sm:$0xff] }
 0x17c   : > { %2195 = vmatpush1.bf16.msra.mxu0 %v2194_v0  ;;  %v1048_v0 = vld [vmem:[%s3073_s30 + $0x3c8] sm:$0xff] }
 0x17d   : > { %2197 = vmatprep.subr.bf16.mxu0 %v2196_v1  ;;  %v3446_v1 = vpack.c.bf16 %v1048_v0, %v1040_v62  ;;  %v1026_v62 = vld [vmem:[%s3073_s30 + $0x318] sm:$0xff] }
 0x17e   : > { %v1034_v0 = vld [vmem:[%s3073_s30 + $0x358] sm:$0xff] }
 0x17f   : > { %2257 = vmatprep.subr.bf16.mxu1 %v3446_v1  ;;  %v3527_v16 = vpack.c.bf16 %v1034_v0, %v1026_v62 }
 0x180   : > { %2199 = vmatpush1.bf16.msra.mxu0 %v2198_v6  ;;  %2259 = vmatpush1.bf16.msra.mxu1 %v3450_v50  ;;  %v938_v6 = vld [vmem:[%s3073_s30 + $0x58] sm:$0xff] }
 0x181   : > { %2201 = vmatprep.subr.bf16.mxu0 %v2200_v7  ;;  %v3862_v7 = vmov 0.0  }
 0x182   : > { %1119 = vmatprep.mubr.f32.mxu1 %v3862_v7 }
 0x184   : > { %2203 = vmatpush1.bf16.msra.mxu0 %v2202_v11  ;;  %v937_v11 = vld [vmem:[%s3073_s30 + $0x50] sm:$0xff] }
 0x185   : > { %2205 = vmatprep.subr.bf16.mxu0 %v2204_v12 }
 0x188   : > { %2207 = vmatpush1.bf16.msra.mxu0 %v2206_v21  ;;  %v3471_v21 = vpack.c.bf16 %v937_v11, %v929_v10 }
 0x189   : > { %2209 = vmatprep.subr.bf16.mxu0 %v2208_v22 }
 0x18c   : > { %2211 = vmatpush1.bf16.msra.mxu0 %v2210_v26  ;;  %v970_v26 = vld [vmem:[%s3073_s30 + $0x158] sm:$0xff] }
 0x18d   : > { %2213 = vmatprep.subr.bf16.mxu0 %v2212_v27  ;;  %v3483_v27 = vpack.c.bf16 %v953_v24, %v945_v23  ;;  %v3487_v29 = vpack.c.bf16 %v970_v26, %v962_v25  ;;  %v931_v25 = vld [vmem:[%s3073_s30 + $0x20] sm:$0xff] }
 0x18e   : > { %v939_v26 = vld [vmem:[%s3073_s30 + $0x60] sm:$0xff] }
 0x190   : > { %2215 = vmatpush1.bf16.msra.mxu0 %v2214_v35  ;;  %v986_v35 = vld [vmem:[%s3073_s30 + $0x1d8] sm:$0xff] }
 0x191   : > { %2217 = vmatprep.subr.bf16.mxu0 %v2216_v36  ;;  %v3494_v36 = vpack.c.bf16 %v969_v32, %v961_v30  ;;  %v3497_v37 = vpack.c.bf16 %v986_v35, %v978_v33  ;;  %v948_v30 = vld [vmem:[%s3073_s30 + $0xa8] sm:$0xff]  ;;  %v3554_v33 = vpack.c.bf16 %v939_v26, %v931_v25 }
 0x192   : > { %v956_v32 = vld [vmem:[%s3073_s30 + $0xe8] sm:$0xff] }
 0x193   : > { %v3557_v35 = vpack.c.bf16 %v956_v32, %v948_v30  ;;  %v1012_v25 = vld [vmem:[%s3073_s30 + $0x2a8] sm:$0xff] }
 0x194   : > { %2219 = vmatpush1.bf16.msra.mxu0 %v2218_v44  ;;  %v1002_v44 = vld [vmem:[%s3073_s30 + $0x258] sm:$0xff]  ;;  %v1020_v26 = vld [vmem:[%s3073_s30 + $0x2e8] sm:$0xff] }
 0x195   : > { %2221 = vmatprep.subr.bf16.mxu0 %v2220_v49  ;;  %v3504_v49 = vpack.c.bf16 %v985_v39, %v977_v38  ;;  %v3507_v51 = vpack.c.bf16 %v1002_v44, %v994_v41  ;;  %v947_v38 = vld [vmem:[%s3073_s30 + $0xa0] sm:$0xff]  ;;  %v964_v41 = vld [vmem:[%s3073_s30 + $0x128] sm:$0xff]  ;;  %v3599_v32 = vpack.c.bf16 %v1020_v26, %v1012_v25  ;;  %v934_v25 = vld [vmem:[%s3073_s30 + $0x38] sm:$0xff] }
 0x196   : > { %v955_v39 = vld [vmem:[%s3073_s30 + $0xe0] sm:$0xff]  ;;  %v972_v44 = vld [vmem:[%s3073_s30 + $0x168] sm:$0xff]  ;;  %v942_v26 = vld [vmem:[%s3073_s30 + $0x78] sm:$0xff] }
 0x198   : > { %2223 = vmatpush1.bf16.msra.mxu0 %v2222_v54  ;;  %v1018_v54 = vld [vmem:[%s3073_s30 + $0x2d8] sm:$0xff] }
 0x199   : > { %2225 = vmatprep.subr.bf16.mxu0 %v2224_v56  ;;  %v3514_v56 = vpack.c.bf16 %v1001_v52, %v993_v47  ;;  %v3517_v59 = vpack.c.bf16 %v1018_v54, %v1010_v53  ;;  %v3565_v47 = vpack.c.bf16 %v955_v39, %v947_v38  ;;  %v3569_v52 = vpack.c.bf16 %v972_v44, %v964_v41  ;;  %v963_v53 = vld [vmem:[%s3073_s30 + $0x120] sm:$0xff]  ;;  %v1028_v41 = vld [vmem:[%s3073_s30 + $0x328] sm:$0xff] }
 0x19a   : > { %v971_v54 = vld [vmem:[%s3073_s30 + $0x160] sm:$0xff]  ;;  %v1036_v44 = vld [vmem:[%s3073_s30 + $0x368] sm:$0xff] }
 0x19b   : > { %v3576_v62 = vpack.c.bf16 %v971_v54, %v963_v53  ;;  %v1011_v38 = vld [vmem:[%s3073_s30 + $0x2a0] sm:$0xff]  ;;  %v3609_v54 = vpack.c.bf16 %v1036_v44, %v1028_v41  ;;  %v933_v41 = vld [vmem:[%s3073_s30 + $0x30] sm:$0xff] }
 0x19c   : > { %2227 = vmatpush1.bf16.msra.mxu0 %v2226_v61  ;;  %v1017_v61 = vld [vmem:[%s3073_s30 + $0x2d0] sm:$0xff]  ;;  %v1019_v39 = vld [vmem:[%s3073_s30 + $0x2e0] sm:$0xff] }
 0x19d   : > { %v3524_v2 = vpack.c.bf16 %v1017_v61, %v1009_v60  ;;  %v980_v60 = vld [vmem:[%s3073_s30 + $0x1a8] sm:$0xff]  ;;  %v3606_v53 = vpack.c.bf16 %v1019_v39, %v1011_v38  ;;  %3898 = vst [vmem:[#allocation19_spill] sm:$0xff] %v3609_v54  ;;  %v3629_v39 = vpack.c.bf16 %v942_v26, %v934_v25  ;;  %v941_v44 = vld [vmem:[%s3073_s30 + $0x70] sm:$0xff]  ;;  %v966_v25 = vld [vmem:[%s3073_s30 + $0x138] sm:$0xff] }
 0x19e   : > { %v988_v61 = vld [vmem:[%s3073_s30 + $0x1e8] sm:$0xff]  ;;  %v974_v26 = vld [vmem:[%s3073_s30 + $0x178] sm:$0xff] }
 0x19f   : > { %919 = vmatmul.mubr.f32.vlgmr.msra.gmra.mrb[0].mxu0 %v3376_v63  ;;  %v3456_v63 = vpack.c.bf16 %v938_v6, %v930_v4  ;;  %v1025_v4 = vld [vmem:[%s3073_s30 + $0x310] sm:$0xff]  ;;  %v3579_v0 = vpack.c.bf16 %v988_v61, %v980_v60  ;;  %v1027_v60 = vld [vmem:[%s3073_s30 + $0x320] sm:$0xff]  ;;  %3902 = vst [vmem:[#allocation23_spill] sm:$0xff] %v3629_v39 }
 0x1a0   : > { %v1033_v6 = vld [vmem:[%s3073_s30 + $0x350] sm:$0xff]  ;;  %v1035_v61 = vld [vmem:[%s3073_s30 + $0x360] sm:$0xff] }
 0x1a1   : > { %2261 = vmatprep.subr.bf16.mxu1 %v3456_v63  ;;  %v3534_v10 = vpack.c.bf16 %v1033_v6, %v1025_v4  ;;  %v979_v4 = vld [vmem:[%s3073_s30 + $0x1a0] sm:$0xff] }
 0x1a2   : > { %v987_v6 = vld [vmem:[%s3073_s30 + $0x1e0] sm:$0xff] }
 0x272   : > { %v920_v12 = vpop.f32.mrb[0].mxu0 }
 0x273   : > { %v2484_v17 = vadd.f32 %v920_v12, %v590_v9  ;;  %v3469_v19 = vpop.f32.mrb[1].mxu0  ;;  %v1050_v9 = vld [vmem:[%s3073_s30 + $0x3d8] sm:$0xff]  ;;  %v1041_v12 = vld [vmem:[%s3073_s30 + $0x390] sm:$0xff] }
 0x274   : > { %v3537_v11 = vpack.c.bf16 %v1050_v9, %v1042_v8  ;;  %v3544_v23 = vpack.c.bf16 %v1049_v13, %v1041_v12  ;;  %v996_v8 = vld [vmem:[%s3073_s30 + $0x228] sm:$0xff]  ;;  %v3586_v12 = vpack.c.bf16 %v987_v6, %v979_v4 }
 0x275   : > { %v3473_v22 = vmax.f32 %v2484_v17, 0.0  ;;  %v940_v17 = vld [vmem:[%s3073_s30 + $0x68] sm:$0xff] }
 0x276   : > { %v3547_v24 = vpack.c.bf16 %v940_v17, %v932_v15  ;;  %v1004_v9 = vld [vmem:[%s3073_s30 + $0x268] sm:$0xff]  ;;  %v995_v15 = vld [vmem:[%s3073_s30 + $0x220] sm:$0xff] }
 0x277   : > { %1120 = vmatmul.mubr.f32.vlgmr.msra.gmra.mrb[0].mxu1 %v3473_v22  ;;  %v3589_v13 = vpack.c.bf16 %v1004_v9, %v996_v8  ;;  %v1003_v17 = vld [vmem:[%s3073_s30 + $0x260] sm:$0xff]  ;;  %v1044_v4 = vld [vmem:[%s3073_s30 + $0x3a8] sm:$0xff]  ;;  %v3616_v8 = vpack.c.bf16 %v1035_v61, %v1027_v60  ;;  %v950_v60 = vld [vmem:[%s3073_s30 + $0xb8] sm:$0xff] }
 0x278   : > { %2263 = vmatpush1.bf16.msra.mxu1 %v3471_v21  ;;  %1190 = vmatprep.mubr.f32.mxu1 %v3862_v7  ;;  %v3596_v30 = vpack.c.bf16 %v1003_v17, %v995_v15  ;;  %v1052_v6 = vld [vmem:[%s3073_s30 + $0x3e8] sm:$0xff]  ;;  %v1043_v15 = vld [vmem:[%s3073_s30 + $0x3a0] sm:$0xff]  ;;  %v958_v61 = vld [vmem:[%s3073_s30 + $0xf8] sm:$0xff] }
 0x279   : > { %2265 = vmatprep.subr.bf16.mxu1 %v3475_v20  ;;  %3899 = vst [vmem:[#allocation20_spill] sm:$0xff] %v3616_v8  ;;  %v3619_v9 = vpack.c.bf16 %v1052_v6, %v1044_v4  ;;  %v1051_v17 = vld [vmem:[%s3073_s30 + $0x3e0] sm:$0xff]  ;;  %v3636_v4 = vpack.c.bf16 %v941_v44, %v933_v41  ;;  %v3639_v6 = vpack.c.bf16 %v958_v61, %v950_v60  ;;  %v3906_v41 = vmov 0.0   ;;  %v965_v60 = vld [vmem:[%s3073_s30 + $0x130] sm:$0xff] }
 0x27a   : > { %v3626_v38 = vpack.c.bf16 %v1051_v17, %v1043_v15  ;;  %v949_v15 = vld [vmem:[%s3073_s30 + $0xb0] sm:$0xff]  ;;  %v3651_v44 = vpack.c.bf16 %v974_v26, %v966_v25  ;;  %v998_v26 = vld [vmem:[%s3073_s30 + $0x238] sm:$0xff] }
 0x27b   : > { %3900 = vst [vmem:[#allocation21_spill] sm:$0xff] %v3619_v9  ;;  %3903 = vst [vmem:[#allocation24_spill] sm:$0xff] %v3636_v4  ;;  %v957_v17 = vld [vmem:[%s3073_s30 + $0xf0] sm:$0xff] }
 0x27c   : > { %2267 = vmatpush1.bf16.msra.mxu1 %v3483_v27  ;;  %3901 = vst [vmem:[#allocation22_spill] sm:$0xff] %v3626_v38  ;;  %3904 = vst [vmem:[#allocation25_spill] sm:$0xff] %v3639_v6  ;;  %v973_v61 = vld [vmem:[%s3073_s30 + $0x170] sm:$0xff] }
 0x27d   : > { %2269 = vmatprep.subr.bf16.mxu1 %v3487_v29  ;;  %3907 = vst [vmem:[#allocation27_spill] sm:$0xff] %v3651_v44  ;;  %v989_v25 = vld [vmem:[%s3073_s30 + $0x1f0] sm:$0xff] }
 0x280   : > { %2271 = vmatpush1.bf16.msra.mxu1 %v3494_v36 }
 0x281   : > { %2273 = vmatprep.subr.bf16.mxu1 %v3497_v37 }
 0x284   : > { %2275 = vmatpush1.bf16.msra.mxu1 %v3504_v49 }
 0x285   : > { %2277 = vmatprep.subr.bf16.mxu1 %v3507_v51 }
 0x288   : > { %2279 = vmatpush1.bf16.msra.mxu1 %v3514_v56 }
 0x289   : > { %2281 = vmatprep.subr.bf16.mxu1 %v3517_v59 }
 0x28c   : > { %2283 = vmatpush1.bf16.msra.mxu1 %v3524_v2 }
 0x28d   : > { %2285 = vmatprep.subr.bf16.mxu1 %v3527_v16 }
 0x290   : > { %2287 = vmatpush1.bf16.msra.mxu1 %v3534_v10 }
 0x291   : > { %2289 = vmatprep.subr.bf16.mxu1 %v3537_v11 }
 0x294   : > { %2291 = vmatpush1.bf16.msra.mxu1 %v3544_v23 }
 0x295   : > { %2293 = vmatprep.subr.bf16.mxu1 %v3547_v24 }
 0x297   : > { %1191 = vmatmul.mubr.f32.vlgmr.msra.gmra.mrb[2].mxu1 %v3473_v22 }
 0x298   : > { %2295 = vmatpush1.bf16.msra.mxu1 %v3554_v33  ;;  %1261 = vmatprep.mubr.f32.mxu1 %v3862_v7  ;;  %v3647_v7 = vpack.c.bf16 %v957_v17, %v949_v15  ;;  %v981_v17 = vld [vmem:[%s3073_s30 + $0x1b0] sm:$0xff] }
 0x299   : > { %2297 = vmatprep.subr.bf16.mxu1 %v3557_v35 }
 0x29a   : > { %3905 = vst [vmem:[#allocation26_spill] sm:$0xff] %v3647_v7 }
 0x29c   : > { %2299 = vmatpush1.bf16.msra.mxu1 %v3565_v47 }
 0x29d   : > { %2301 = vmatprep.subr.bf16.mxu1 %v3569_v52 }
 0x2a0   : > { %2303 = vmatpush1.bf16.msra.mxu1 %v3576_v62 }
 0x2a1   : > { %2305 = vmatprep.subr.bf16.mxu1 %v3579_v0 }
 0x2a4   : > { %2307 = vmatpush1.bf16.msra.mxu1 %v3586_v12 }
 0x2a5   : > { %2309 = vmatprep.subr.bf16.mxu1 %v3589_v13 }
 0x2a8   : > { %2311 = vmatpush1.bf16.msra.mxu1 %v3596_v30 }
 0x2a9   : > { %2313 = vmatprep.subr.bf16.mxu1 %v3599_v32 }
 0x2ac   : > { %2315 = vmatpush1.bf16.msra.mxu1 %v3606_v53 }
 0x2ad   : > { %2317 = vmatprep.subr.bf16.mxu1 %v3609_v54  ;;  %v1045_v54 = vld [vmem:[%s3073_s30 + $0x3b0] sm:$0xff] }
 0x2b0   : > { %2319 = vmatpush1.bf16.msra.mxu1 %v3616_v8 }
 0x2b1   : > { %2321 = vmatprep.subr.bf16.mxu1 %v3619_v9  ;;  %v3668_v9 = vpack.c.bf16 %v989_v25, %v981_v17  ;;  %v1013_v25 = vld [vmem:[%s3073_s30 + $0x2b0] sm:$0xff] }
 0x2b3   : > { %3910 = vst [vmem:[#allocation30_spill] sm:$0xff] %v3668_v9 }
 0x2b4   : > { %2323 = vmatpush1.bf16.msra.mxu1 %v3626_v38  ;;  %v990_v38 = vld [vmem:[%s3073_s30 + $0x1f8] sm:$0xff] }
 0x2b5   : > { %2325 = vmatprep.subr.bf16.mxu1 %v3629_v39  ;;  %v982_v39 = vld [vmem:[%s3073_s30 + $0x1b8] sm:$0xff] }
 0x2b6   : > { %v3661_v15 = vpack.c.bf16 %v990_v38, %v982_v39  ;;  %v1005_v38 = vld [vmem:[%s3073_s30 + $0x270] sm:$0xff]  ;;  %v1014_v39 = vld [vmem:[%s3073_s30 + $0x2b8] sm:$0xff] }
 0x2b7   : > { %1262 = vmatmul.mubr.f32.vlgmr.msra.gmra.mrb[4].mxu1 %v3473_v22 }
 0x2b8   : > { %2327 = vmatpush1.bf16.msra.mxu1 %v3636_v4  ;;  %1332 = vmatprep.mubr.f32.mxu1 %v3906_v41  ;;  %v3658_v4 = vpack.c.bf16 %v973_v61, %v965_v60  ;;  %3909 = vst [vmem:[#allocation29_spill] sm:$0xff] %v3661_v15  ;;  %v997_v61 = vld [vmem:[%s3073_s30 + $0x230] sm:$0xff] }
 0x2b9   : > { %2329 = vmatprep.subr.bf16.mxu1 %v3639_v6  ;;  %v1006_v6 = vld [vmem:[%s3073_s30 + $0x278] sm:$0xff] }
 0x2ba   : > { %3908 = vst [vmem:[#allocation28_spill] sm:$0xff] %v3658_v4  ;;  %v3671_v60 = vpack.c.bf16 %v1006_v6, %v998_v26  ;;  %v1021_v6 = vld [vmem:[%s3073_s30 + $0x2f0] sm:$0xff]  ;;  %v1030_v26 = vld [vmem:[%s3073_s30 + $0x338] sm:$0xff] }
 0x2bc   : > { %2331 = vmatpush1.bf16.msra.mxu1 %v3647_v7  ;;  %3911 = vst [vmem:[#allocation31_spill] sm:$0xff] %v3671_v60  ;;  %v3678_v7 = vpack.c.bf16 %v1005_v38, %v997_v61  ;;  %v1029_v61 = vld [vmem:[%s3073_s30 + $0x330] sm:$0xff] }
 0x2bd   : > { %2333 = vmatprep.subr.bf16.mxu1 %v3651_v44  ;;  %v1022_v44 = vld [vmem:[%s3073_s30 + $0x2f8] sm:$0xff]  ;;  %v1037_v38 = vld [vmem:[%s3073_s30 + $0x370] sm:$0xff] }
 0x2be   : > { %3912 = vst [vmem:[#allocation32_spill] sm:$0xff] %v3678_v7  ;;  %v3681_v17 = vpack.c.bf16 %v1022_v44, %v1014_v39  ;;  %v3698_v44 = vpack.c.bf16 %v1037_v38, %v1029_v61 }
 0x2c0   : > { %2335 = vmatpush1.bf16.msra.mxu1 %v3658_v4  ;;  %v3688_v4 = vpack.c.bf16 %v1021_v6, %v1013_v25 }
 0x2c1   : > { %2337 = vmatprep.subr.bf16.mxu1 %v3661_v15  ;;  %v1038_v15 = vld [vmem:[%s3073_s30 + $0x378] sm:$0xff] }
 0x2c2   : > { %v3691_v8 = vpack.c.bf16 %v1038_v15, %v1030_v26 }
 0x2c4   : > { %2339 = vmatpush1.bf16.msra.mxu1 %v3668_v9  ;;  %v1046_v9 = vld [vmem:[%s3073_s30 + $0x3b8] sm:$0xff] }
 0x2c5   : > { %2341 = vmatprep.subr.bf16.mxu1 %v3671_v60  ;;  %v1054_v60 = vld [vmem:[%s3073_s30 + $0x3f8] sm:$0xff] }
 0x2c6   : > { %v3701_v39 = vpack.c.bf16 %v1054_v60, %v1046_v9 }
 0x2c8   : > { %2343 = vmatpush1.bf16.msra.mxu1 %v3678_v7  ;;  %v1053_v7 = vld [vmem:[%s3073_s30 + $0x3f0] sm:$0xff] }
 0x2c9   : > { %2345 = vmatprep.subr.bf16.mxu1 %v3681_v17  ;;  %v3706_v25 = vpack.c.bf16 %v1053_v7, %v1045_v54  ;;  %v3926_v7 = vld [vmem:[#allocation32_spill] sm:$0xff] }
 0x2cc   : > { %2347 = vmatpush1.bf16.msra.mxu1 %v3688_v4 }
 0x2cd   : > { %2349 = vmatprep.subr.bf16.mxu1 %v3691_v8 }
 0x2d0   : > { %2351 = vmatpush1.bf16.msra.mxu1 %v3698_v44 }
 0x2d1   : > { %2353 = vmatprep.subr.bf16.mxu1 %v3701_v39 }
 0x2d4   : > { %2355 = vmatpush1.bf16.msra.mxu1 %v3706_v25 }
 0x2d5   : > { %2357 = vmatprep.subr.bf16.mxu1 %v3252_v40  ;;  %v593_v40 = vsub.s32 1, %v3101_v34 }
 0x2d7   : > { %1333 = vmatmul.mubr.f32.vlgmr.msra.gmra.mrb[6].mxu1 %v3473_v22  ;;  %v2807_v22 = vmov 1966171168  }
 0x2d8   : > { %2359 = vmatpush1.bf16.msra.mxu1 %v3257_v45  ;;  %1482 = vmatprep.mubr.f32.mxu1 %v3906_v41  ;;  %v594_v45 = vrot.slane %v3462_v42, %v593_v40 }
 0x2d9   : > { %2361 = vmatprep.subr.bf16.mxu1 %v3259_v48 }
 0x2da   : > { %v2485_v48 = vadd.f32 %v3469_v19, %v594_v45 }
 0x2dc   : > { %2363 = vmatpush1.bf16.msra.mxu1 %v3269_v55  ;;  %v926_v55 = vmax.f32 %v2485_v48, 0.0 }
 0x2dd   : > { %2365 = vmatprep.subr.bf16.mxu1 %v3273_v58  ;;  %v3913_v58 = vld [vmem:[#allocation19_spill] sm:$0xff] }
 0x2e0   : > { %2367 = vmatpush1.bf16.msra.mxu1 %v3283_v3  ;;  %v3914_v3 = vld [vmem:[#allocation20_spill] sm:$0xff] }
 0x2e1   : > { %2369 = vmatprep.subr.bf16.mxu1 %v3287_v5  ;;  %v3915_v5 = vld [vmem:[#allocation21_spill] sm:$0xff] }
 0x2e4   : > { %2371 = vmatpush1.bf16.msra.mxu1 %v3297_v14  ;;  %v3916_v14 = vld [vmem:[#allocation22_spill] sm:$0xff] }
 0x2e5   : > { %2373 = vmatprep.subr.bf16.mxu1 %v3301_v18  ;;  %v3917_v18 = vld [vmem:[#allocation23_spill] sm:$0xff] }
 0x2e8   : > { %2375 = vmatpush1.bf16.msra.mxu1 %v3311_v28  ;;  %v3918_v28 = vld [vmem:[#allocation24_spill] sm:$0xff] }
 0x2e9   : > { %2377 = vmatprep.subr.bf16.mxu1 %v3315_v31  ;;  %v3919_v31 = vld [vmem:[#allocation25_spill] sm:$0xff] }
 0x2ec   : > { %2379 = vmatpush1.bf16.msra.mxu1 %v3325_v43  ;;  %v3920_v43 = vld [vmem:[#allocation26_spill] sm:$0xff] }
 0x2ed   : > { %2381 = vmatprep.subr.bf16.mxu1 %v3328_v46  ;;  %v3921_v46 = vld [vmem:[#allocation27_spill] sm:$0xff] }
 0x2f0   : > { %2383 = vmatpush1.bf16.msra.mxu1 %v3337_v57  ;;  %v3922_v57 = vld [vmem:[#allocation28_spill] sm:$0xff] }
 0x2f1   : > { %2385 = vmatprep.subr.bf16.mxu1 %v3446_v1  ;;  %v3923_v1 = vld [vmem:[#allocation29_spill] sm:$0xff] }
 0x2f4   : > { %2387 = vmatpush1.bf16.msra.mxu1 %v3450_v50  ;;  %v3924_v50 = vld [vmem:[#allocation30_spill] sm:$0xff] }
 0x2f5   : > { %2389 = vmatprep.subr.bf16.mxu1 %v3456_v63  ;;  %v3925_v63 = vld [vmem:[#allocation31_spill] sm:$0xff] }
 0x2f7   : > { %1483 = vmatmul.mubr.f32.vlgmr.msra.gmra.mrb[8].mxu1 %v926_v55 }
 0x2f8   : > { %2391 = vmatpush1.bf16.msra.mxu1 %v3471_v21  ;;  %1553 = vmatprep.mubr.f32.mxu1 %v3906_v41 }
 0x2f9   : > { %2393 = vmatprep.subr.bf16.mxu1 %v3475_v20  ;;  %v1352_v20 = vunpack.c.l.s4 %v2807_v22 }
 0x2fc   : > { %2395 = vmatpush1.bf16.msra.mxu1 %v3483_v27  ;;  %v1353_v27 = vunpack.c.0.s8 %v1352_v20 }
 0x2fd   : > { %2397 = vmatprep.subr.bf16.mxu1 %v3487_v29 }
 0x2fe   : > { %v1356_v29 = vsub.s32 %v1353_v27, %v3101_v34 }
 0x300   : > { %2399 = vmatpush1.bf16.msra.mxu1 %v3494_v36 }
 0x301   : > { %2401 = vmatprep.subr.bf16.mxu1 %v3497_v37 }
 0x304   : > { %2403 = vmatpush1.bf16.msra.mxu1 %v3504_v49 }
 0x305   : > { %2405 = vmatprep.subr.bf16.mxu1 %v3507_v51 }
 0x308   : > { %2407 = vmatpush1.bf16.msra.mxu1 %v3514_v56 }
 0x309   : > { %2409 = vmatprep.subr.bf16.mxu1 %v3517_v59 }
 0x30c   : > { %2411 = vmatpush1.bf16.msra.mxu1 %v3524_v2 }
 0x30d   : > { %2413 = vmatprep.subr.bf16.mxu1 %v3527_v16 }
 0x310   : > { %2415 = vmatpush1.bf16.msra.mxu1 %v3534_v10 }
 0x311   : > { %2417 = vmatprep.subr.bf16.mxu1 %v3537_v11 }
 0x314   : > { %2419 = vmatpush1.bf16.msra.mxu1 %v3544_v23 }
 0x315   : > { %2421 = vmatprep.subr.bf16.mxu1 %v3547_v24 }
 0x317   : > { %1554 = vmatmul.mubr.f32.vlgmr.msra.gmra.mrb[10].mxu1 %v926_v55 }
 0x318   : > { %2423 = vmatpush1.bf16.msra.mxu1 %v3554_v33  ;;  %1624 = vmatprep.mubr.f32.mxu1 %v3906_v41 }
 0x319   : > { %2425 = vmatprep.subr.bf16.mxu1 %v3557_v35 }
 0x31c   : > { %2427 = vmatpush1.bf16.msra.mxu1 %v3565_v47 }
 0x31d   : > { %2429 = vmatprep.subr.bf16.mxu1 %v3569_v52 }
 0x320   : > { %2431 = vmatpush1.bf16.msra.mxu1 %v3576_v62 }
 0x321   : > { %2433 = vmatprep.subr.bf16.mxu1 %v3579_v0 }
 0x324   : > { %2435 = vmatpush1.bf16.msra.mxu1 %v3586_v12 }
 0x325   : > { %2437 = vmatprep.subr.bf16.mxu1 %v3589_v13 }
 0x328   : > { %2439 = vmatpush1.bf16.msra.mxu1 %v3596_v30 }
 0x329   : > { %2441 = vmatprep.subr.bf16.mxu1 %v3599_v32 }
 0x32c   : > { %2443 = vmatpush1.bf16.msra.mxu1 %v3606_v53 }
 0x32d   : > { %2445 = vmatprep.subr.bf16.mxu1 %v3913_v58 }
 0x330   : > { %2447 = vmatpush1.bf16.msra.mxu1 %v3914_v3 }
 0x331   : > { %2449 = vmatprep.subr.bf16.mxu1 %v3915_v5 }
 0x334   : > { %2451 = vmatpush1.bf16.msra.mxu1 %v3916_v14 }
 0x335   : > { %2453 = vmatprep.subr.bf16.mxu1 %v3917_v18 }
 0x337   : > { %1625 = vmatmul.mubr.f32.vlgmr.msra.gmra.mrb[12].mxu1 %v926_v55 }
 0x338   : > { %2455 = vmatpush1.bf16.msra.mxu1 %v3918_v28  ;;  %1695 = vmatprep.mubr.f32.mxu1 %v3906_v41 }
 0x339   : > { %2457 = vmatprep.subr.bf16.mxu1 %v3919_v31 }
 0x33c   : > { %2459 = vmatpush1.bf16.msra.mxu1 %v3920_v43 }
 0x33d   : > { %2461 = vmatprep.subr.bf16.mxu1 %v3921_v46 }
 0x340   : > { %2463 = vmatpush1.bf16.msra.mxu1 %v3922_v57 }
 0x341   : > { %2465 = vmatprep.subr.bf16.mxu1 %v3923_v1 }
 0x344   : > { %2467 = vmatpush1.bf16.msra.mxu1 %v3924_v50 }
 0x345   : > { %2469 = vmatprep.subr.bf16.mxu1 %v3925_v63 }
 0x348   : > { %2471 = vmatpush1.bf16.msra.mxu1 %v3926_v7 }
 0x349   : > { %2473 = vmatprep.subr.bf16.mxu1 %v3681_v17 }
 0x34a   : > { %v1121_v42 = vpop.f32.mrb[0].mxu1 }
 0x34b   : > { %v1123_v19 = vpop.f32.mrb[1].mxu1 }
 0x34c   : > { %v1347_v21 = vcombine.low %v1121_v42, %v1123_v19  ;;  %2475 = vmatpush1.bf16.msra.mxu1 %v3688_v4 }
 0x34d   : > { %2477 = vmatprep.subr.bf16.mxu1 %v3691_v8 }
 0x34e   : > { %v1357_v51 = vrot.slane %v1347_v21, %v1356_v29 }
 0x350   : > { %2479 = vmatpush1.bf16.msra.mxu1 %v3698_v44 }
 0x351   : > { %2481 = vmatprep.subr.bf16.mxu1 %v3701_v39 }
 0x354   : > { %2483 = vmatpush1.bf16.msra.mxu1 %v3706_v25 }
 0x357   : > { %1696 = vmatmul.mubr.f32.vlgmr.msra.gmra.mrb[14].mxu1 %v926_v55 }
 0x36a   : > { %v1192_v36 = vpop.f32.mrb[2].mxu1 }
 0x36b   : > { %v1194_v37 = vpop.f32.mrb[3].mxu1 }
 0x36c   : > { %v1348_v49 = vcombine.low %v1192_v36, %v1194_v37 }
 0x36e   : > { %v1364_v56 = vrot.slane %v1348_v49, %v1356_v29 }
 0x370   : > { %v1379_v59 = vcombine.low %v1357_v51, %v1364_v56  ;;  %v1380_v2 = vcombine.high %v1357_v51, %v1364_v56 }
 0x372   : > { %v1389_v34 = vrot.slane %v1379_v59, %v1356_v29  ;;  %v1396_v0 = vrot.slane %v1380_v2, %v1356_v29 }
 0x38a   : > { %v1263_v16 = vpop.f32.mrb[4].mxu1 }
 0x38b   : > { %v1265_v10 = vpop.f32.mrb[5].mxu1 }
 0x38c   : > { %v1349_v11 = vcombine.low %v1263_v16, %v1265_v10 }
 0x38e   : > { %v1371_v35 = vrot.slane %v1349_v11, %v1356_v29 }
 0x3aa   : > { %v1334_v23 = vpop.f32.mrb[6].mxu1 }
 0x3ab   : > { %v1336_v24 = vpop.f32.mrb[7].mxu1 }
 0x3ac   : > { %v1350_v33 = vcombine.low %v1334_v23, %v1336_v24 }
 0x3ae   : > { %v1378_v47 = vrot.slane %v1350_v33, %v1356_v29 }
 0x3b0   : > { %v1381_v52 = vcombine.low %v1371_v35, %v1378_v47  ;;  %v1382_v62 = vcombine.high %v1371_v35, %v1378_v47 }
 0x3b2   : > { %v1403_v12 = vrot.slane %v1381_v52, %v1356_v29  ;;  %v1410_v13 = vrot.slane %v1382_v62, %v1356_v29 }
 0x3b4   : > { %v1411_v30 = vcombine.low %v1389_v34, %v1403_v12  ;;  %v1412_v32 = vcombine.low %v1396_v0, %v1410_v13 }
 0x3b6   : > { %1415 = vst [vmem:[%s3784_s9] ss:$2 sm:$0xff] %v1411_v30  ;;  %1960 = vst [vmem:[%s3784_s9 + $0x10] ss:$2 sm:$0xff] %v1412_v32 }
 0x3ca   : > { %v1484_v53 = vpop.f32.mrb[8].mxu1 }
 0x3cb   : > { %v1486_v54 = vpop.f32.mrb[9].mxu1 }
 0x3cc   : > { %v1710_v8 = vcombine.low %v1484_v53, %v1486_v54 }
 0x3ce   : > { %v1720_v15 = vrot.slane %v1710_v8, %v1356_v29 }
 0x3ea   : > { %v1555_v9 = vpop.f32.mrb[10].mxu1 }
 0x3eb   : > { %v1557_v4 = vpop.f32.mrb[11].mxu1 }
 0x3ec   : > { %v1711_v41 = vcombine.low %v1555_v9, %v1557_v4 }
 0x3ee   : > { %v1727_v60 = vrot.slane %v1711_v41, %v1356_v29 }
 0x3f0   : > { %v1742_v17 = vcombine.low %v1720_v15, %v1727_v60  ;;  %v1743_v6 = vcombine.high %v1720_v15, %v1727_v60 }
 0x3f2   : > { %v1752_v58 = vrot.slane %v1742_v17, %v1356_v29  ;;  %v1759_v3 = vrot.slane %v1743_v6, %v1356_v29 }
 0x40a   : > { %v1626_v26 = vpop.f32.mrb[12].mxu1 }
 0x40b   : > { %v1628_v61 = vpop.f32.mrb[13].mxu1 }
 0x40c   : > { %v1712_v38 = vcombine.low %v1626_v26, %v1628_v61 }
 0x40e   : > { %v1734_v40 = vrot.slane %v1712_v38, %v1356_v29 }
 0x42a   : > { %v1697_v44 = vpop.f32.mrb[14].mxu1 }
 0x42b   : > { %v1699_v39 = vpop.f32.mrb[15].mxu1 }
 0x42c   : > { %v1713_v25 = vcombine.low %v1697_v44, %v1699_v39 }
 0x42e   : > { %v1741_v45 = vrot.slane %v1713_v25, %v1356_v29 }
 0x430   : > { %v1744_v48 = vcombine.low %v1734_v40, %v1741_v45  ;;  %v1745_v55 = vcombine.high %v1734_v40, %v1741_v45 }
 0x432   : > { %v1766_v5 = vrot.slane %v1744_v48, %v1356_v29  ;;  %v1773_v14 = vrot.slane %v1745_v55, %v1356_v29 }
 0x434   : > { %v1774_v18 = vcombine.low %v1752_v58, %v1766_v5  ;;  %v1775_v28 = vcombine.low %v1759_v3, %v1773_v14 }
 0x436   : > { %1961 = vst [vmem:[%s3784_s9 + $0x1] ss:$2 sm:$0xff] %v1774_v18  ;;  %1962 = vst [vmem:[%s3784_s9 + $0x11] ss:$2 sm:$0xff] %v1775_v28 }
 0x437   : > { %2718 = shalt.err (!%p2715_p3)
}
 0x438   : > { %s2719_s11 = scalar_lea.hbm %s3795_s21, 512  ;;  %s2723_s25 = scalar_lea.hbm %s3849_s4, 2048 }
 0x439   : > { %p2720_p11 = scmp.ne.s32.totalorder %s3795_s21, %s2719_s11  ;;  %p2724_p5 = scmp.lt.u32.totalorder %s3795_s21, %s3849_s4 }
 0x43a   : > { %p2725_p1 = scmp.lt.u32.totalorder %s2723_s25, %s2719_s11  ;;  %p2727_p4 = scmp.lt.u32.totalorder %s2719_s11, %s3795_s21 }
 0x43b   : > { %p2721_p2 = pnand %p2720_p11, %p3927_p9 }
 0x43c   : > { %p2726_p0 = por %p2725_p1, %p2724_p5 }
 0x43d   : > { %p2722_p10 = pneg %p2721_p2 }
 0x43e   : > { %p2728_p12 = por %p2727_p4, %p2726_p0 }
 0x440   : > { %p2729_p13 = pnand %p2728_p12, %p2722_p10 }
 0x442   : > { %2732 = shalt.err (!%p2729_p13)
}
 0x443   : > { %s2809_s28 = smov 256   ;;  %s2810_s10 = smov 1024  }
 0x444   : > { %s2811_s30 = smov 16  }
 0x445   : > { %2502 = dma.vmem_to_hbm [thread:$0]  (%p3927_p9), %s3790_s29, 512, %s3795_s21, %s1783_s27, %s2809_s28, %s2810_s10, %s2811_s30  }
 0x446 PF: > { %s3928_s13 = sld [smem:[#allocation18_spill]]  ;;  %p2525_p7 = scmp.ge.s32.totalorder %s2795_s20, 2 }
 0x447   : > { %s1814_s9 = sand.u32 1, %s2775_s15  }
 0x448   : > { %s1815_s7 = scalar_lea.sflag [#allocation4], %s1814_s9 }
 0x44c   : > { %p3929_p6 = scmp.ne.s32.totalorder %s3928_s13, 0 }
 0x44e   : > { %p2519_p8 = pnand %p2525_p7, %p3929_p6 }
 0x450   : > { %2770 = dma.done.wait (!%p2519_p8), %s1815_s7, 512  }
 0x451   : > { %2772 = vsyncadd (!%p2519_p8), %s1815_s7, 4294966784  ;;  %s24_s20 = sadd.s32 1, %s2795_s20   ;;  %s3930_s26 = sld [smem:[#allocation15_spill]] }
 0x452   : > { %p21_p3 = scmp.ge.s32.totalorder %s24_s20, 6   ;;  %s3931_s17 = sld [smem:[#allocation17_spill]] }
 0x453   : > { %s3932_s5 = sld [smem:[#allocation16_spill]]  ;;  %s3933_s15 = smov %s2779_s16 }
 0x454   : > { %s3935_s18 = smov %s2791_s19  ;;  %23 = sbr.rel (!%p21_p3) target bundleno = 11 (0xb), region = 114 }
 0x457   : > { %s3934_s16 = smov %s3930_s26 }
 0x459   : > { %s3936_s19 = smov %s3932_s5 }
 0x45b   :  { %1820 = vsyncpa [#allocation3], 1 }
 0x45c   :  { %1822 = vsyncpa [#allocation3 + $0x1], 1 }
 0x45d   :  { %1823 = vsyncpa [#allocation6], 1 }
 0x45e   :  { %1825 = vsyncpa [#allocation6 + $0x1], 1 }
 0x45f   :  { %1826 = vsyncpa [#allocation9], 1 }
 0x460   :  { %1828 = vsyncpa [#allocation9 + $0x1], 1 }
 0x461   :  { %1829 = vsyncpa [#allocation4], 1 }
 0x462   :  { %1831 = vsyncpa [#allocation4 + $0x1], 1 }

</bundles_post_ra>
